<compile_context>
chip_gen: v7x
topology: tpu7x:2x2x1
jax: 0.10.0
libtpu: 0.0.40
codegen_flags: <defaults>
</compile_context>

<pallas_src>
import numpy as np
import jax
import jax.numpy as jnp
from jax.experimental import pallas as pl
from jax.experimental.pallas import tpu as pltpu

LEAKY_SLOPE = 0.2
BN_EPS = 1e-5


def _make_kernel(k, H, W):
    p = (k - 1) // 2

    def kernel(x_ref, row_ref, col_ref,
               w1_ref, g1_ref, b1_ref,
               w2_ref, g2_ref, b2_ref,
               w3_ref, g3_ref, b3_ref,
               out_ref):
        Cin, P = x_ref.shape
        inv_p = 1.0 / P

        def leaky(v):
            return jnp.maximum(v, LEAKY_SLOPE * v)

        def bn(v, g_ref, b_ref):
            # training-mode BatchNorm2d, fused single pass: sum + sum-of-squares.
            s = jnp.sum(v, axis=1, keepdims=True)
            ss = jnp.sum(v * v, axis=1, keepdims=True)
            mean = s * inv_p
            var = ss * inv_p - mean * mean
            scale = g_ref[...] * jax.lax.rsqrt(var + BN_EPS)
            return v * scale + (b_ref[...] - mean * scale)

        x = x_ref[...]            # (Cin, P) f32, lane-dense
        row = row_ref[...]        # (1, P) i32: spatial y of each flat position
        col = col_ref[...]        # (1, P) i32: spatial x of each flat position

        # ---- conv1: 1x1 conv (MXU, bf16 operands) -> BN1 -> LeakyReLU --------
        h1 = jnp.dot(w1_ref[...], x.astype(jnp.bfloat16),
                     preferred_element_type=jnp.float32)
        h1 = leaky(bn(h1, g1_ref, b1_ref))          # (Cin, P) f32

        # ---- conv2: reflection-padded kxk grouped conv -> BN2 ----------------
        # Each tap is a static lane shift of h1; reflection at the borders is
        # handled by selecting differently-shifted copies with row/col masks.
        shifted = {}

        def shift(delta):
            # value[q] = h1[q + delta]  (masks guarantee no batch/row crossing)
            if delta not in shifted:
                s = delta % P
                shifted[delta] = h1 if s == 0 else jnp.concatenate(
                    [h1[:, s:], h1[:, :s]], axis=1)
            return shifted[delta]

        def axis_cases(d, size, idx):
            # returns [(mask, effective_shift)] partitioning positions along one
            # spatial axis for a tap offset d, with reflection at both edges.
            cases = []
            lo, hi = max(0, -d), min(size, size - d)
            cases.append(((idx >= lo) & (idx < hi), d))           # interior
            for i0 in range(max(0, -d)):                          # low-edge reflect
                cases.append((idx == i0, -2 * i0 - d))
            for i0 in range(size - d, size):                      # high-edge reflect
                cases.append((idx == i0, 2 * (size - 1 - i0) - d))
            return cases

        taps = []
        for kh in range(k):
            for kw in range(k):
                dy, dx = kh - p, kw - p
                if dy == 0 and dx == 0:
                    taps.append(h1)
                    continue
                tap = jnp.zeros_like(h1)
                for rmask, ddy in axis_cases(dy, H, row):
                    for cmask, ddx in axis_cases(dx, W, col):
                        msk = (rmask & cmask).astype(jnp.float32)   # (1, P)
                        tap = tap + msk * shift(ddy * W + ddx)
                taps.append(tap)
        taps_cat = jnp.concatenate(taps, axis=0)     # (k*k*Cin, P)

        # single fused MXU matmul for all taps (dense-expanded grouped weight)
        h2 = jnp.dot(w2_ref[...], taps_cat.astype(jnp.bfloat16),
                     preferred_element_type=jnp.float32)
        h2 = bn(h2, g2_ref, b2_ref)

        # ---- residual add + LeakyReLU ----------------------------------------
        m = leaky(x + h2)

        # ---- conv3: 1x1 conv -> BN3 -> LeakyReLU ------------------------------
        h3 = jnp.dot(w3_ref[...], m.astype(jnp.bfloat16),
                     preferred_element_type=jnp.float32)
        out_ref[...] = leaky(bn(h3, g3_ref, b3_ref))   # (Cout, P), lane-dense store

    return kernel


def inverted_bottleneck_pallas(x_nchw, params, k):
    N, Cin, H, W = x_nchw.shape
    Cout = params["w3"].shape[0]
    P = N * H * W

    # layout plumbing (wrapper-side): channels leading, flat spatial on lanes
    x_flat = jnp.transpose(x_nchw, (1, 0, 2, 3)).reshape(Cin, P)

    # static row / col index of every flattened position (host-built, tiny)
    q = np.arange(P, dtype=np.int32)
    row_idx = jnp.asarray(((q // W) % H)[None, :], dtype=jnp.int32)
    col_idx = jnp.asarray((q % W)[None, :], dtype=jnp.int32)

    vmem = pl.BlockSpec(memory_space=pltpu.MemorySpace.VMEM)
    out_flat = pl.pallas_call(
        _make_kernel(k, H, W),
        out_shape=jax.ShapeDtypeStruct((Cout, P), jnp.float32),
        in_specs=[vmem] * 12,
        out_specs=vmem,
        compiler_params=pltpu.CompilerParams(vmem_limit_bytes=32 * 1024 * 1024),
    )(x_flat, row_idx, col_idx,
      params["w1"], params["g1"], params["b1"],
      params["w2"], params["g2"], params["b2"],
      params["w3"], params["g3"], params["b3"])

    # back to module-facing NCHW
    return out_flat.reshape(Cout, N, H, W).transpose(1, 0, 2, 3)


# --------------------- parameter setup (deterministic) ----------------------
def init_torch_style_params(key, cin, cout, k, groups):
    ks = jax.random.split(key, 9)
    return dict(
        w1_t=jax.random.normal(ks[0], (cin, cin), jnp.float32) * 0.3,               # Conv2d(cin,cin,1) [out,in]
        w2_t=jax.random.normal(ks[1], (cin, cin // groups, k, k), jnp.float32) * 0.3,  # grouped kxk [out,in/g,kh,kw]
        w3_t=jax.random.normal(ks[2], (cout, cin), jnp.float32) * 0.3,               # Conv2d(cin,cout,1) [out,in]
        g1=1.0 + 0.1 * jax.random.normal(ks[3], (cin,), jnp.float32),
        b1=0.1 * jax.random.normal(ks[4], (cin,), jnp.float32),
        g2=1.0 + 0.1 * jax.random.normal(ks[5], (cin,), jnp.float32),
        b2=0.1 * jax.random.normal(ks[6], (cin,), jnp.float32),
        g3=1.0 + 0.1 * jax.random.normal(ks[7], (cout,), jnp.float32),
        b3=0.1 * jax.random.normal(ks[8], (cout,), jnp.float32),
    )


def flatten_grouped_weight(w2_t, groups):
    # torch grouped-conv weight (Cout=Cin, Cin/g, k, k) -> dense (Cin, k*k*Cin),
    # column index = (kh*k + kw)*Cin + c  (matches the in-kernel tap concat order).
    # NOTE: dense expansion is only kept while Cin <= ~128; at scaled channel
    # counts use a (groups, Cg, k*k*Cg) batched contraction instead.
    cout, cg, k, _ = w2_t.shape
    cin = cg * groups
    w = np.asarray(w2_t)
    flat = np.zeros((cout, k * k * cin), np.float32)
    for o in range(cout):
        g = o // cg
        for ci in range(cg):
            c = g * cg + ci
            for kh in range(k):
                for kw in range(k):
                    flat[o, (kh * k + kw) * cin + c] = w[o, ci, kh, kw]
    return flat


def to_kernel_params(tp, groups):
    return dict(
        w1=tp["w1_t"].astype(jnp.bfloat16),
        w2=jnp.asarray(flatten_grouped_weight(tp["w2_t"], groups), jnp.bfloat16),
        w3=tp["w3_t"].astype(jnp.bfloat16),
        g1=tp["g1"].reshape(-1, 1), b1=tp["b1"].reshape(-1, 1),
        g2=tp["g2"].reshape(-1, 1), b2=tp["b2"].reshape(-1, 1),
        g3=tp["g3"].reshape(-1, 1), b3=tp["b3"].reshape(-1, 1),
    )


# --------------------------- pure-JAX reference ------------------------------
def reference_nchw(x, tp, k, groups):
    def leaky(v):
        return jnp.where(v >= 0, v, LEAKY_SLOPE * v)

    def bn(v, g, b):
        mean = jnp.mean(v, axis=(0, 2, 3), keepdims=True)
        var = jnp.mean((v - mean) ** 2, axis=(0, 2, 3), keepdims=True)
        return (v - mean) / jnp.sqrt(var + BN_EPS) * g.reshape(1, -1, 1, 1) \
            + b.reshape(1, -1, 1, 1)

    p = (k - 1) // 2
    h1 = leaky(bn(jnp.einsum('nchw,oc->nohw', x, tp["w1_t"]), tp["g1"], tp["b1"]))
    h1p = jnp.pad(h1, ((0, 0), (0, 0), (p, p), (p, p)), mode='reflect')
    h2 = jax.lax.conv_general_dilated(
        h1p, tp["w2_t"], (1, 1), 'VALID',
        dimension_numbers=('NCHW', 'OIHW', 'NCHW'),
        feature_group_count=groups)
    h2 = bn(h2, tp["g2"], tp["b2"])
    m = leaky(x + h2)
    h3 = leaky(bn(jnp.einsum('nchw,oc->nohw', m, tp["w3_t"]), tp["g3"], tp["b3"]))
    return h3


if __name__ == "__main__":
    N, Cin, H, W = 2, 4, 16, 16
    Cout, kernel_size, groups = 8, 3, 2

    key = jax.random.PRNGKey(0)
    kx, kp = jax.random.split(key)
    x_nchw = jax.random.normal(kx, (N, Cin, H, W), jnp.float32)   # PyTorch layout

    torch_params = init_torch_style_params(kp, Cin, Cout, kernel_size, groups)
    kernel_params = to_kernel_params(torch_params, groups)

    out = jax.block_until_ready(
        inverted_bottleneck_pallas(x_nchw, kernel_params, kernel_size))
    ref = jax.block_until_ready(
        reference_nchw(x_nchw, torch_params, kernel_size, groups))

    # tolerance loosened because MXU operands are bf16 (accumulation stays f32)
    np.testing.assert_allclose(np.asarray(out), np.asarray(ref),
                               rtol=5e-2, atol=5e-2)

    print("KERNEL_OK")
</pallas_src>

<mosaic_0001>
module attributes {stable_mosaic.version = 11 : i64} {
  func.func @kernel(%arg0: memref<4x512xf32, #tpu.memory_space<vmem>>, %arg1: memref<1x512xi32, #tpu.memory_space<vmem>>, %arg2: memref<1x512xi32, #tpu.memory_space<vmem>>, %arg3: memref<4x4xbf16, #tpu.memory_space<vmem>>, %arg4: memref<4x1xf32, #tpu.memory_space<vmem>>, %arg5: memref<4x1xf32, #tpu.memory_space<vmem>>, %arg6: memref<4x36xbf16, #tpu.memory_space<vmem>>, %arg7: memref<4x1xf32, #tpu.memory_space<vmem>>, %arg8: memref<4x1xf32, #tpu.memory_space<vmem>>, %arg9: memref<8x4xbf16, #tpu.memory_space<vmem>>, %arg10: memref<8x1xf32, #tpu.memory_space<vmem>>, %arg11: memref<8x1xf32, #tpu.memory_space<vmem>>, %arg12: memref<8x512xf32, #tpu.memory_space<vmem>>) attributes {dimension_semantics = [], scalar_prefetch = 0 : i64, scratch_operands = 0 : i64, tpu.core_type = #tpu.core_type<tc>} {
    %c0 = arith.constant 0 : index
    %c0_0 = arith.constant 0 : index
    %0 = vector.load %arg0[%c0, %c0_0] : memref<4x512xf32, #tpu.memory_space<vmem>>, vector<4x512xf32>
    %c0_1 = arith.constant 0 : index
    %c0_2 = arith.constant 0 : index
    %1 = vector.load %arg1[%c0_1, %c0_2] : memref<1x512xi32, #tpu.memory_space<vmem>>, vector<1x512xi32>
    %c0_3 = arith.constant 0 : index
    %c0_4 = arith.constant 0 : index
    %2 = vector.load %arg2[%c0_3, %c0_4] : memref<1x512xi32, #tpu.memory_space<vmem>>, vector<1x512xi32>
    %c0_5 = arith.constant 0 : index
    %c0_6 = arith.constant 0 : index
    %3 = vector.load %arg3[%c0_5, %c0_6] : memref<4x4xbf16, #tpu.memory_space<vmem>>, vector<4x4xbf16>
    %4 = arith.truncf %0 : vector<4x512xf32> to vector<4x512xbf16>
    %cst = arith.constant dense<0.000000e+00> : vector<4x512xf32>
    %5 = tpu.matmul %3, %4, %cst {dimension_numbers = #tpu.dot_dimension_numbers<[1], [0], [0], [1], [0, 0, 1, 1], [], []>} : vector<4x4xbf16>, vector<4x512xbf16>, vector<4x512xf32> -> vector<4x512xf32>
    %cst_7 = arith.constant dense<0.000000e+00> : vector<4xf32>
    %6 = vector.multi_reduction <add>, %5, %cst_7 [1] : vector<4x512xf32> to vector<4xf32>
    %7 = vector.shape_cast %6 : vector<4xf32> to vector<4x1xf32>
    %8 = arith.mulf %5, %5 : vector<4x512xf32>
    %cst_8 = arith.constant dense<0.000000e+00> : vector<4xf32>
    %9 = vector.multi_reduction <add>, %8, %cst_8 [1] : vector<4x512xf32> to vector<4xf32>
    %10 = vector.shape_cast %9 : vector<4xf32> to vector<4x1xf32>
    %cst_9 = arith.constant 0.001953125 : f32
    %11 = vector.broadcast %cst_9 : f32 to vector<4x1xf32>
    %12 = arith.mulf %7, %11 : vector<4x1xf32>
    %cst_10 = arith.constant 0.001953125 : f32
    %13 = vector.broadcast %cst_10 : f32 to vector<4x1xf32>
    %14 = arith.mulf %10, %13 : vector<4x1xf32>
    %15 = arith.mulf %12, %12 : vector<4x1xf32>
    %16 = arith.subf %14, %15 : vector<4x1xf32>
    %c0_11 = arith.constant 0 : index
    %c0_12 = arith.constant 0 : index
    %17 = vector.load %arg4[%c0_11, %c0_12] : memref<4x1xf32, #tpu.memory_space<vmem>>, vector<4x1xf32>
    %cst_13 = arith.constant 9.99999974E-6 : f32
    %18 = vector.broadcast %cst_13 : f32 to vector<4x1xf32>
    %19 = arith.addf %16, %18 : vector<4x1xf32>
    %20 = math.rsqrt %19 : vector<4x1xf32>
    %21 = arith.mulf %17, %20 : vector<4x1xf32>
    %22 = vector.broadcast %21 : vector<4x1xf32> to vector<4x512xf32>
    %23 = arith.mulf %5, %22 : vector<4x512xf32>
    %c0_14 = arith.constant 0 : index
    %c0_15 = arith.constant 0 : index
    %24 = vector.load %arg5[%c0_14, %c0_15] : memref<4x1xf32, #tpu.memory_space<vmem>>, vector<4x1xf32>
    %25 = arith.mulf %12, %21 : vector<4x1xf32>
    %26 = arith.subf %24, %25 : vector<4x1xf32>
    %27 = vector.broadcast %26 : vector<4x1xf32> to vector<4x512xf32>
    %28 = arith.addf %23, %27 : vector<4x512xf32>
    %cst_16 = arith.constant 2.000000e-01 : f32
    %29 = vector.broadcast %cst_16 : f32 to vector<4x512xf32>
    %30 = arith.mulf %29, %28 : vector<4x512xf32>
    %31 = arith.maximumf %28, %30 : vector<4x512xf32>
    %cst_17 = arith.constant 0.000000e+00 : f32
    %32 = vector.broadcast %cst_17 : f32 to vector<4x512xf32>
    %c1_i32 = arith.constant 1 : i32
    %33 = vector.broadcast %c1_i32 : i32 to vector<1x512xi32>
    %34 = arith.cmpi sge, %1, %33 : vector<1x512xi32>
    %c16_i32 = arith.constant 16 : i32
    %35 = vector.broadcast %c16_i32 : i32 to vector<1x512xi32>
    %36 = arith.cmpi slt, %1, %35 : vector<1x512xi32>
    %37 = arith.andi %34, %36 : vector<1x512xi1>
    %c0_i32 = arith.constant 0 : i32
    %38 = vector.broadcast %c0_i32 : i32 to vector<1x512xi32>
    %39 = arith.cmpi eq, %1, %38 : vector<1x512xi32>
    %c1_i32_18 = arith.constant 1 : i32
    %40 = vector.broadcast %c1_i32_18 : i32 to vector<1x512xi32>
    %41 = arith.cmpi sge, %2, %40 : vector<1x512xi32>
    %c16_i32_19 = arith.constant 16 : i32
    %42 = vector.broadcast %c16_i32_19 : i32 to vector<1x512xi32>
    %43 = arith.cmpi slt, %2, %42 : vector<1x512xi32>
    %44 = arith.andi %41, %43 : vector<1x512xi1>
    %c0_i32_20 = arith.constant 0 : i32
    %45 = vector.broadcast %c0_i32_20 : i32 to vector<1x512xi32>
    %46 = arith.cmpi eq, %2, %45 : vector<1x512xi32>
    %47 = arith.andi %37, %44 : vector<1x512xi1>
    %48 = arith.extui %47 : vector<1x512xi1> to vector<1x512xi32>
    %49 = arith.sitofp %48 : vector<1x512xi32> to vector<1x512xf32>
    %50 = vector.extract_strided_slice %31 {offsets = [0, 495], sizes = [4, 17], strides = [1, 1]} : vector<4x512xf32> to vector<4x17xf32>
    %51 = vector.extract_strided_slice %31 {offsets = [0, 0], sizes = [4, 495], strides = [1, 1]} : vector<4x512xf32> to vector<4x495xf32>
    %52 = tpu.concatenate %50, %51 in 1 : vector<4x17xf32>, vector<4x495xf32> -> vector<4x512xf32>
    %53 = vector.broadcast %49 : vector<1x512xf32> to vector<4x512xf32>
    %54 = arith.mulf %53, %52 : vector<4x512xf32>
    %55 = arith.addf %32, %54 : vector<4x512xf32>
    %56 = arith.andi %37, %46 : vector<1x512xi1>
    %57 = arith.extui %56 : vector<1x512xi1> to vector<1x512xi32>
    %58 = arith.sitofp %57 : vector<1x512xi32> to vector<1x512xf32>
    %59 = vector.extract_strided_slice %31 {offsets = [0, 497], sizes = [4, 15], strides = [1, 1]} : vector<4x512xf32> to vector<4x15xf32>
    %60 = vector.extract_strided_slice %31 {offsets = [0, 0], sizes = [4, 497], strides = [1, 1]} : vector<4x512xf32> to vector<4x497xf32>
    %61 = tpu.concatenate %59, %60 in 1 : vector<4x15xf32>, vector<4x497xf32> -> vector<4x512xf32>
    %62 = vector.broadcast %58 : vector<1x512xf32> to vector<4x512xf32>
    %63 = arith.mulf %62, %61 : vector<4x512xf32>
    %64 = arith.addf %55, %63 : vector<4x512xf32>
    %c1_i32_21 = arith.constant 1 : i32
    %65 = vector.broadcast %c1_i32_21 : i32 to vector<1x512xi32>
    %66 = arith.cmpi sge, %2, %65 : vector<1x512xi32>
    %c16_i32_22 = arith.constant 16 : i32
    %67 = vector.broadcast %c16_i32_22 : i32 to vector<1x512xi32>
    %68 = arith.cmpi slt, %2, %67 : vector<1x512xi32>
    %69 = arith.andi %66, %68 : vector<1x512xi1>
    %c0_i32_23 = arith.constant 0 : i32
    %70 = vector.broadcast %c0_i32_23 : i32 to vector<1x512xi32>
    %71 = arith.cmpi eq, %2, %70 : vector<1x512xi32>
    %72 = arith.andi %39, %69 : vector<1x512xi1>
    %73 = arith.extui %72 : vector<1x512xi1> to vector<1x512xi32>
    %74 = arith.sitofp %73 : vector<1x512xi32> to vector<1x512xf32>
    %75 = vector.extract_strided_slice %31 {offsets = [0, 15], sizes = [4, 497], strides = [1, 1]} : vector<4x512xf32> to vector<4x497xf32>
    %76 = vector.extract_strided_slice %31 {offsets = [0, 0], sizes = [4, 15], strides = [1, 1]} : vector<4x512xf32> to vector<4x15xf32>
    %77 = tpu.concatenate %75, %76 in 1 : vector<4x497xf32>, vector<4x15xf32> -> vector<4x512xf32>
    %78 = vector.broadcast %74 : vector<1x512xf32> to vector<4x512xf32>
    %79 = arith.mulf %78, %77 : vector<4x512xf32>
    %80 = arith.addf %64, %79 : vector<4x512xf32>
    %81 = arith.andi %39, %71 : vector<1x512xi1>
    %82 = arith.extui %81 : vector<1x512xi1> to vector<1x512xi32>
    %83 = arith.sitofp %82 : vector<1x512xi32> to vector<1x512xf32>
    %84 = vector.extract_strided_slice %31 {offsets = [0, 17], sizes = [4, 495], strides = [1, 1]} : vector<4x512xf32> to vector<4x495xf32>
    %85 = vector.extract_strided_slice %31 {offsets = [0, 0], sizes = [4, 17], strides = [1, 1]} : vector<4x512xf32> to vector<4x17xf32>
    %86 = tpu.concatenate %84, %85 in 1 : vector<4x495xf32>, vector<4x17xf32> -> vector<4x512xf32>
    %87 = vector.broadcast %83 : vector<1x512xf32> to vector<4x512xf32>
    %88 = arith.mulf %87, %86 : vector<4x512xf32>
    %89 = arith.addf %80, %88 : vector<4x512xf32>
    %cst_24 = arith.constant 0.000000e+00 : f32
    %90 = vector.broadcast %cst_24 : f32 to vector<4x512xf32>
    %c1_i32_25 = arith.constant 1 : i32
    %91 = vector.broadcast %c1_i32_25 : i32 to vector<1x512xi32>
    %92 = arith.cmpi sge, %1, %91 : vector<1x512xi32>
    %c16_i32_26 = arith.constant 16 : i32
    %93 = vector.broadcast %c16_i32_26 : i32 to vector<1x512xi32>
    %94 = arith.cmpi slt, %1, %93 : vector<1x512xi32>
    %95 = arith.andi %92, %94 : vector<1x512xi1>
    %c0_i32_27 = arith.constant 0 : i32
    %96 = vector.broadcast %c0_i32_27 : i32 to vector<1x512xi32>
    %97 = arith.cmpi eq, %1, %96 : vector<1x512xi32>
    %c0_i32_28 = arith.constant 0 : i32
    %98 = vector.broadcast %c0_i32_28 : i32 to vector<1x512xi32>
    %99 = arith.cmpi sge, %2, %98 : vector<1x512xi32>
    %c16_i32_29 = arith.constant 16 : i32
    %100 = vector.broadcast %c16_i32_29 : i32 to vector<1x512xi32>
    %101 = arith.cmpi slt, %2, %100 : vector<1x512xi32>
    %102 = arith.andi %99, %101 : vector<1x512xi1>
    %103 = arith.andi %95, %102 : vector<1x512xi1>
    %104 = arith.extui %103 : vector<1x512xi1> to vector<1x512xi32>
    %105 = arith.sitofp %104 : vector<1x512xi32> to vector<1x512xf32>
    %106 = vector.extract_strided_slice %31 {offsets = [0, 496], sizes = [4, 16], strides = [1, 1]} : vector<4x512xf32> to vector<4x16xf32>
    %107 = vector.extract_strided_slice %31 {offsets = [0, 0], sizes = [4, 496], strides = [1, 1]} : vector<4x512xf32> to vector<4x496xf32>
    %108 = tpu.concatenate %106, %107 in 1 : vector<4x16xf32>, vector<4x496xf32> -> vector<4x512xf32>
    %109 = vector.broadcast %105 : vector<1x512xf32> to vector<4x512xf32>
    %110 = arith.mulf %109, %108 : vector<4x512xf32>
    %111 = arith.addf %90, %110 : vector<4x512xf32>
    %c0_i32_30 = arith.constant 0 : i32
    %112 = vector.broadcast %c0_i32_30 : i32 to vector<1x512xi32>
    %113 = arith.cmpi sge, %2, %112 : vector<1x512xi32>
    %c16_i32_31 = arith.constant 16 : i32
    %114 = vector.broadcast %c16_i32_31 : i32 to vector<1x512xi32>
    %115 = arith.cmpi slt, %2, %114 : vector<1x512xi32>
    %116 = arith.andi %113, %115 : vector<1x512xi1>
    %117 = arith.andi %97, %116 : vector<1x512xi1>
    %118 = arith.extui %117 : vector<1x512xi1> to vector<1x512xi32>
    %119 = arith.sitofp %118 : vector<1x512xi32> to vector<1x512xf32>
    %120 = vector.extract_strided_slice %31 {offsets = [0, 16], sizes = [4, 496], strides = [1, 1]} : vector<4x512xf32> to vector<4x496xf32>
    %121 = vector.extract_strided_slice %31 {offsets = [0, 0], sizes = [4, 16], strides = [1, 1]} : vector<4x512xf32> to vector<4x16xf32>
    %122 = tpu.concatenate %120, %121 in 1 : vector<4x496xf32>, vector<4x16xf32> -> vector<4x512xf32>
    %123 = vector.broadcast %119 : vector<1x512xf32> to vector<4x512xf32>
    %124 = arith.mulf %123, %122 : vector<4x512xf32>
    %125 = arith.addf %111, %124 : vector<4x512xf32>
    %cst_32 = arith.constant 0.000000e+00 : f32
    %126 = vector.broadcast %cst_32 : f32 to vector<4x512xf32>
    %c1_i32_33 = arith.constant 1 : i32
    %127 = vector.broadcast %c1_i32_33 : i32 to vector<1x512xi32>
    %128 = arith.cmpi sge, %1, %127 : vector<1x512xi32>
    %c16_i32_34 = arith.constant 16 : i32
    %129 = vector.broadcast %c16_i32_34 : i32 to vector<1x512xi32>
    %130 = arith.cmpi slt, %1, %129 : vector<1x512xi32>
    %131 = arith.andi %128, %130 : vector<1x512xi1>
    %c0_i32_35 = arith.constant 0 : i32
    %132 = vector.broadcast %c0_i32_35 : i32 to vector<1x512xi32>
    %133 = arith.cmpi eq, %1, %132 : vector<1x512xi32>
    %c0_i32_36 = arith.constant 0 : i32
    %134 = vector.broadcast %c0_i32_36 : i32 to vector<1x512xi32>
    %135 = arith.cmpi sge, %2, %134 : vector<1x512xi32>
    %c15_i32 = arith.constant 15 : i32
    %136 = vector.broadcast %c15_i32 : i32 to vector<1x512xi32>
    %137 = arith.cmpi slt, %2, %136 : vector<1x512xi32>
    %138 = arith.andi %135, %137 : vector<1x512xi1>
    %c15_i32_37 = arith.constant 15 : i32
    %139 = vector.broadcast %c15_i32_37 : i32 to vector<1x512xi32>
    %140 = arith.cmpi eq, %2, %139 : vector<1x512xi32>
    %141 = arith.andi %131, %138 : vector<1x512xi1>
    %142 = arith.extui %141 : vector<1x512xi1> to vector<1x512xi32>
    %143 = arith.sitofp %142 : vector<1x512xi32> to vector<1x512xf32>
    %144 = vector.broadcast %143 : vector<1x512xf32> to vector<4x512xf32>
    %145 = arith.mulf %144, %61 : vector<4x512xf32>
    %146 = arith.addf %126, %145 : vector<4x512xf32>
    %147 = arith.andi %131, %140 : vector<1x512xi1>
    %148 = arith.extui %147 : vector<1x512xi1> to vector<1x512xi32>
    %149 = arith.sitofp %148 : vector<1x512xi32> to vector<1x512xf32>
    %150 = vector.broadcast %149 : vector<1x512xf32> to vector<4x512xf32>
    %151 = arith.mulf %150, %52 : vector<4x512xf32>
    %152 = arith.addf %146, %151 : vector<4x512xf32>
    %c0_i32_38 = arith.constant 0 : i32
    %153 = vector.broadcast %c0_i32_38 : i32 to vector<1x512xi32>
    %154 = arith.cmpi sge, %2, %153 : vector<1x512xi32>
    %c15_i32_39 = arith.constant 15 : i32
    %155 = vector.broadcast %c15_i32_39 : i32 to vector<1x512xi32>
    %156 = arith.cmpi slt, %2, %155 : vector<1x512xi32>
    %157 = arith.andi %154, %156 : vector<1x512xi1>
    %c15_i32_40 = arith.constant 15 : i32
    %158 = vector.broadcast %c15_i32_40 : i32 to vector<1x512xi32>
    %159 = arith.cmpi eq, %2, %158 : vector<1x512xi32>
    %160 = arith.andi %133, %157 : vector<1x512xi1>
    %161 = arith.extui %160 : vector<1x512xi1> to vector<1x512xi32>
    %162 = arith.sitofp %161 : vector<1x512xi32> to vector<1x512xf32>
    %163 = vector.broadcast %162 : vector<1x512xf32> to vector<4x512xf32>
    %164 = arith.mulf %163, %86 : vector<4x512xf32>
    %165 = arith.addf %152, %164 : vector<4x512xf32>
    %166 = arith.andi %133, %159 : vector<1x512xi1>
    %167 = arith.extui %166 : vector<1x512xi1> to vector<1x512xi32>
    %168 = arith.sitofp %167 : vector<1x512xi32> to vector<1x512xf32>
    %169 = vector.broadcast %168 : vector<1x512xf32> to vector<4x512xf32>
    %170 = arith.mulf %169, %77 : vector<4x512xf32>
    %171 = arith.addf %165, %170 : vector<4x512xf32>
    %cst_41 = arith.constant 0.000000e+00 : f32
    %172 = vector.broadcast %cst_41 : f32 to vector<4x512xf32>
    %c0_i32_42 = arith.constant 0 : i32
    %173 = vector.broadcast %c0_i32_42 : i32 to vector<1x512xi32>
    %174 = arith.cmpi sge, %1, %173 : vector<1x512xi32>
    %c16_i32_43 = arith.constant 16 : i32
    %175 = vector.broadcast %c16_i32_43 : i32 to vector<1x512xi32>
    %176 = arith.cmpi slt, %1, %175 : vector<1x512xi32>
    %177 = arith.andi %174, %176 : vector<1x512xi1>
    %c1_i32_44 = arith.constant 1 : i32
    %178 = vector.broadcast %c1_i32_44 : i32 to vector<1x512xi32>
    %179 = arith.cmpi sge, %2, %178 : vector<1x512xi32>
    %c16_i32_45 = arith.constant 16 : i32
    %180 = vector.broadcast %c16_i32_45 : i32 to vector<1x512xi32>
    %181 = arith.cmpi slt, %2, %180 : vector<1x512xi32>
    %182 = arith.andi %179, %181 : vector<1x512xi1>
    %c0_i32_46 = arith.constant 0 : i32
    %183 = vector.broadcast %c0_i32_46 : i32 to vector<1x512xi32>
    %184 = arith.cmpi eq, %2, %183 : vector<1x512xi32>
    %185 = arith.andi %177, %182 : vector<1x512xi1>
    %186 = arith.extui %185 : vector<1x512xi1> to vector<1x512xi32>
    %187 = arith.sitofp %186 : vector<1x512xi32> to vector<1x512xf32>
    %188 = vector.extract_strided_slice %31 {offsets = [0, 511], sizes = [4, 1], strides = [1, 1]} : vector<4x512xf32> to vector<4x1xf32>
    %189 = vector.extract_strided_slice %31 {offsets = [0, 0], sizes = [4, 511], strides = [1, 1]} : vector<4x512xf32> to vector<4x511xf32>
    %190 = tpu.concatenate %188, %189 in 1 : vector<4x1xf32>, vector<4x511xf32> -> vector<4x512xf32>
    %191 = vector.broadcast %187 : vector<1x512xf32> to vector<4x512xf32>
    %192 = arith.mulf %191, %190 : vector<4x512xf32>
    %193 = arith.addf %172, %192 : vector<4x512xf32>
    %194 = arith.andi %177, %184 : vector<1x512xi1>
    %195 = arith.extui %194 : vector<1x512xi1> to vector<1x512xi32>
    %196 = arith.sitofp %195 : vector<1x512xi32> to vector<1x512xf32>
    %197 = vector.extract_strided_slice %31 {offsets = [0, 1], sizes = [4, 511], strides = [1, 1]} : vector<4x512xf32> to vector<4x511xf32>
    %198 = vector.extract_strided_slice %31 {offsets = [0, 0], sizes = [4, 1], strides = [1, 1]} : vector<4x512xf32> to vector<4x1xf32>
    %199 = tpu.concatenate %197, %198 in 1 : vector<4x511xf32>, vector<4x1xf32> -> vector<4x512xf32>
    %200 = vector.broadcast %196 : vector<1x512xf32> to vector<4x512xf32>
    %201 = arith.mulf %200, %199 : vector<4x512xf32>
    %202 = arith.addf %193, %201 : vector<4x512xf32>
    %cst_47 = arith.constant 0.000000e+00 : f32
    %203 = vector.broadcast %cst_47 : f32 to vector<4x512xf32>
    %c0_i32_48 = arith.constant 0 : i32
    %204 = vector.broadcast %c0_i32_48 : i32 to vector<1x512xi32>
    %205 = arith.cmpi sge, %1, %204 : vector<1x512xi32>
    %c16_i32_49 = arith.constant 16 : i32
    %206 = vector.broadcast %c16_i32_49 : i32 to vector<1x512xi32>
    %207 = arith.cmpi slt, %1, %206 : vector<1x512xi32>
    %208 = arith.andi %205, %207 : vector<1x512xi1>
    %c0_i32_50 = arith.constant 0 : i32
    %209 = vector.broadcast %c0_i32_50 : i32 to vector<1x512xi32>
    %210 = arith.cmpi sge, %2, %209 : vector<1x512xi32>
    %c15_i32_51 = arith.constant 15 : i32
    %211 = vector.broadcast %c15_i32_51 : i32 to vector<1x512xi32>
    %212 = arith.cmpi slt, %2, %211 : vector<1x512xi32>
    %213 = arith.andi %210, %212 : vector<1x512xi1>
    %c15_i32_52 = arith.constant 15 : i32
    %214 = vector.broadcast %c15_i32_52 : i32 to vector<1x512xi32>
    %215 = arith.cmpi eq, %2, %214 : vector<1x512xi32>
    %216 = arith.andi %208, %213 : vector<1x512xi1>
    %217 = arith.extui %216 : vector<1x512xi1> to vector<1x512xi32>
    %218 = arith.sitofp %217 : vector<1x512xi32> to vector<1x512xf32>
    %219 = vector.broadcast %218 : vector<1x512xf32> to vector<4x512xf32>
    %220 = arith.mulf %219, %199 : vector<4x512xf32>
    %221 = arith.addf %203, %220 : vector<4x512xf32>
    %222 = arith.andi %208, %215 : vector<1x512xi1>
    %223 = arith.extui %222 : vector<1x512xi1> to vector<1x512xi32>
    %224 = arith.sitofp %223 : vector<1x512xi32> to vector<1x512xf32>
    %225 = vector.broadcast %224 : vector<1x512xf32> to vector<4x512xf32>
    %226 = arith.mulf %225, %190 : vector<4x512xf32>
    %227 = arith.addf %221, %226 : vector<4x512xf32>
    %cst_53 = arith.constant 0.000000e+00 : f32
    %228 = vector.broadcast %cst_53 : f32 to vector<4x512xf32>
    %c0_i32_54 = arith.constant 0 : i32
    %229 = vector.broadcast %c0_i32_54 : i32 to vector<1x512xi32>
    %230 = arith.cmpi sge, %1, %229 : vector<1x512xi32>
    %c15_i32_55 = arith.constant 15 : i32
    %231 = vector.broadcast %c15_i32_55 : i32 to vector<1x512xi32>
    %232 = arith.cmpi slt, %1, %231 : vector<1x512xi32>
    %233 = arith.andi %230, %232 : vector<1x512xi1>
    %c15_i32_56 = arith.constant 15 : i32
    %234 = vector.broadcast %c15_i32_56 : i32 to vector<1x512xi32>
    %235 = arith.cmpi eq, %1, %234 : vector<1x512xi32>
    %c1_i32_57 = arith.constant 1 : i32
    %236 = vector.broadcast %c1_i32_57 : i32 to vector<1x512xi32>
    %237 = arith.cmpi sge, %2, %236 : vector<1x512xi32>
    %c16_i32_58 = arith.constant 16 : i32
    %238 = vector.broadcast %c16_i32_58 : i32 to vector<1x512xi32>
    %239 = arith.cmpi slt, %2, %238 : vector<1x512xi32>
    %240 = arith.andi %237, %239 : vector<1x512xi1>
    %c0_i32_59 = arith.constant 0 : i32
    %241 = vector.broadcast %c0_i32_59 : i32 to vector<1x512xi32>
    %242 = arith.cmpi eq, %2, %241 : vector<1x512xi32>
    %243 = arith.andi %233, %240 : vector<1x512xi1>
    %244 = arith.extui %243 : vector<1x512xi1> to vector<1x512xi32>
    %245 = arith.sitofp %244 : vector<1x512xi32> to vector<1x512xf32>
    %246 = vector.broadcast %245 : vector<1x512xf32> to vector<4x512xf32>
    %247 = arith.mulf %246, %77 : vector<4x512xf32>
    %248 = arith.addf %228, %247 : vector<4x512xf32>
    %249 = arith.andi %233, %242 : vector<1x512xi1>
    %250 = arith.extui %249 : vector<1x512xi1> to vector<1x512xi32>
    %251 = arith.sitofp %250 : vector<1x512xi32> to vector<1x512xf32>
    %252 = vector.broadcast %251 : vector<1x512xf32> to vector<4x512xf32>
    %253 = arith.mulf %252, %86 : vector<4x512xf32>
    %254 = arith.addf %248, %253 : vector<4x512xf32>
    %c1_i32_60 = arith.constant 1 : i32
    %255 = vector.broadcast %c1_i32_60 : i32 to vector<1x512xi32>
    %256 = arith.cmpi sge, %2, %255 : vector<1x512xi32>
    %c16_i32_61 = arith.constant 16 : i32
    %257 = vector.broadcast %c16_i32_61 : i32 to vector<1x512xi32>
    %258 = arith.cmpi slt, %2, %257 : vector<1x512xi32>
    %259 = arith.andi %256, %258 : vector<1x512xi1>
    %c0_i32_62 = arith.constant 0 : i32
    %260 = vector.broadcast %c0_i32_62 : i32 to vector<1x512xi32>
    %261 = arith.cmpi eq, %2, %260 : vector<1x512xi32>
    %262 = arith.andi %235, %259 : vector<1x512xi1>
    %263 = arith.extui %262 : vector<1x512xi1> to vector<1x512xi32>
    %264 = arith.sitofp %263 : vector<1x512xi32> to vector<1x512xf32>
    %265 = vector.broadcast %264 : vector<1x512xf32> to vector<4x512xf32>
    %266 = arith.mulf %265, %52 : vector<4x512xf32>
    %267 = arith.addf %254, %266 : vector<4x512xf32>
    %268 = arith.andi %235, %261 : vector<1x512xi1>
    %269 = arith.extui %268 : vector<1x512xi1> to vector<1x512xi32>
    %270 = arith.sitofp %269 : vector<1x512xi32> to vector<1x512xf32>
    %271 = vector.broadcast %270 : vector<1x512xf32> to vector<4x512xf32>
    %272 = arith.mulf %271, %61 : vector<4x512xf32>
    %273 = arith.addf %267, %272 : vector<4x512xf32>
    %cst_63 = arith.constant 0.000000e+00 : f32
    %274 = vector.broadcast %cst_63 : f32 to vector<4x512xf32>
    %c0_i32_64 = arith.constant 0 : i32
    %275 = vector.broadcast %c0_i32_64 : i32 to vector<1x512xi32>
    %276 = arith.cmpi sge, %1, %275 : vector<1x512xi32>
    %c15_i32_65 = arith.constant 15 : i32
    %277 = vector.broadcast %c15_i32_65 : i32 to vector<1x512xi32>
    %278 = arith.cmpi slt, %1, %277 : vector<1x512xi32>
    %279 = arith.andi %276, %278 : vector<1x512xi1>
    %c15_i32_66 = arith.constant 15 : i32
    %280 = vector.broadcast %c15_i32_66 : i32 to vector<1x512xi32>
    %281 = arith.cmpi eq, %1, %280 : vector<1x512xi32>
    %c0_i32_67 = arith.constant 0 : i32
    %282 = vector.broadcast %c0_i32_67 : i32 to vector<1x512xi32>
    %283 = arith.cmpi sge, %2, %282 : vector<1x512xi32>
    %c16_i32_68 = arith.constant 16 : i32
    %284 = vector.broadcast %c16_i32_68 : i32 to vector<1x512xi32>
    %285 = arith.cmpi slt, %2, %284 : vector<1x512xi32>
    %286 = arith.andi %283, %285 : vector<1x512xi1>
    %287 = arith.andi %279, %286 : vector<1x512xi1>
    %288 = arith.extui %287 : vector<1x512xi1> to vector<1x512xi32>
    %289 = arith.sitofp %288 : vector<1x512xi32> to vector<1x512xf32>
    %290 = vector.broadcast %289 : vector<1x512xf32> to vector<4x512xf32>
    %291 = arith.mulf %290, %122 : vector<4x512xf32>
    %292 = arith.addf %274, %291 : vector<4x512xf32>
    %c0_i32_69 = arith.constant 0 : i32
    %293 = vector.broadcast %c0_i32_69 : i32 to vector<1x512xi32>
    %294 = arith.cmpi sge, %2, %293 : vector<1x512xi32>
    %c16_i32_70 = arith.constant 16 : i32
    %295 = vector.broadcast %c16_i32_70 : i32 to vector<1x512xi32>
    %296 = arith.cmpi slt, %2, %295 : vector<1x512xi32>
    %297 = arith.andi %294, %296 : vector<1x512xi1>
    %298 = arith.andi %281, %297 : vector<1x512xi1>
    %299 = arith.extui %298 : vector<1x512xi1> to vector<1x512xi32>
    %300 = arith.sitofp %299 : vector<1x512xi32> to vector<1x512xf32>
    %301 = vector.broadcast %300 : vector<1x512xf32> to vector<4x512xf32>
    %302 = arith.mulf %301, %108 : vector<4x512xf32>
    %303 = arith.addf %292, %302 : vector<4x512xf32>
    %cst_71 = arith.constant 0.000000e+00 : f32
    %304 = vector.broadcast %cst_71 : f32 to vector<4x512xf32>
    %c0_i32_72 = arith.constant 0 : i32
    %305 = vector.broadcast %c0_i32_72 : i32 to vector<1x512xi32>
    %306 = arith.cmpi sge, %1, %305 : vector<1x512xi32>
    %c15_i32_73 = arith.constant 15 : i32
    %307 = vector.broadcast %c15_i32_73 : i32 to vector<1x512xi32>
    %308 = arith.cmpi slt, %1, %307 : vector<1x512xi32>
    %309 = arith.andi %306, %308 : vector<1x512xi1>
    %c15_i32_74 = arith.constant 15 : i32
    %310 = vector.broadcast %c15_i32_74 : i32 to vector<1x512xi32>
    %311 = arith.cmpi eq, %1, %310 : vector<1x512xi32>
    %c0_i32_75 = arith.constant 0 : i32
    %312 = vector.broadcast %c0_i32_75 : i32 to vector<1x512xi32>
    %313 = arith.cmpi sge, %2, %312 : vector<1x512xi32>
    %c15_i32_76 = arith.constant 15 : i32
    %314 = vector.broadcast %c15_i32_76 : i32 to vector<1x512xi32>
    %315 = arith.cmpi slt, %2, %314 : vector<1x512xi32>
    %316 = arith.andi %313, %315 : vector<1x512xi1>
    %c15_i32_77 = arith.constant 15 : i32
    %317 = vector.broadcast %c15_i32_77 : i32 to vector<1x512xi32>
    %318 = arith.cmpi eq, %2, %317 : vector<1x512xi32>
    %319 = arith.andi %309, %316 : vector<1x512xi1>
    %320 = arith.extui %319 : vector<1x512xi1> to vector<1x512xi32>
    %321 = arith.sitofp %320 : vector<1x512xi32> to vector<1x512xf32>
    %322 = vector.broadcast %321 : vector<1x512xf32> to vector<4x512xf32>
    %323 = arith.mulf %322, %86 : vector<4x512xf32>
    %324 = arith.addf %304, %323 : vector<4x512xf32>
    %325 = arith.andi %309, %318 : vector<1x512xi1>
    %326 = arith.extui %325 : vector<1x512xi1> to vector<1x512xi32>
    %327 = arith.sitofp %326 : vector<1x512xi32> to vector<1x512xf32>
    %328 = vector.broadcast %327 : vector<1x512xf32> to vector<4x512xf32>
    %329 = arith.mulf %328, %77 : vector<4x512xf32>
    %330 = arith.addf %324, %329 : vector<4x512xf32>
    %c0_i32_78 = arith.constant 0 : i32
    %331 = vector.broadcast %c0_i32_78 : i32 to vector<1x512xi32>
    %332 = arith.cmpi sge, %2, %331 : vector<1x512xi32>
    %c15_i32_79 = arith.constant 15 : i32
    %333 = vector.broadcast %c15_i32_79 : i32 to vector<1x512xi32>
    %334 = arith.cmpi slt, %2, %333 : vector<1x512xi32>
    %335 = arith.andi %332, %334 : vector<1x512xi1>
    %c15_i32_80 = arith.constant 15 : i32
    %336 = vector.broadcast %c15_i32_80 : i32 to vector<1x512xi32>
    %337 = arith.cmpi eq, %2, %336 : vector<1x512xi32>
    %338 = arith.andi %311, %335 : vector<1x512xi1>
    %339 = arith.extui %338 : vector<1x512xi1> to vector<1x512xi32>
    %340 = arith.sitofp %339 : vector<1x512xi32> to vector<1x512xf32>
    %341 = vector.broadcast %340 : vector<1x512xf32> to vector<4x512xf32>
    %342 = arith.mulf %341, %61 : vector<4x512xf32>
    %343 = arith.addf %330, %342 : vector<4x512xf32>
    %344 = arith.andi %311, %337 : vector<1x512xi1>
    %345 = arith.extui %344 : vector<1x512xi1> to vector<1x512xi32>
    %346 = arith.sitofp %345 : vector<1x512xi32> to vector<1x512xf32>
    %347 = vector.broadcast %346 : vector<1x512xf32> to vector<4x512xf32>
    %348 = arith.mulf %347, %52 : vector<4x512xf32>
    %349 = arith.addf %343, %348 : vector<4x512xf32>
    %350 = tpu.concatenate %89, %125, %171, %202, %31, %227, %273, %303, %349 in 0 : vector<4x512xf32>, vector<4x512xf32>, vector<4x512xf32>, vector<4x512xf32>, vector<4x512xf32>, vector<4x512xf32>, vector<4x512xf32>, vector<4x512xf32>, vector<4x512xf32> -> vector<36x512xf32>
    %c0_81 = arith.constant 0 : index
    %c0_82 = arith.constant 0 : index
    %351 = vector.load %arg6[%c0_81, %c0_82] : memref<4x36xbf16, #tpu.memory_space<vmem>>, vector<4x36xbf16>
    %352 = arith.truncf %350 : vector<36x512xf32> to vector<36x512xbf16>
    %cst_83 = arith.constant dense<0.000000e+00> : vector<4x512xf32>
    %353 = tpu.matmul %351, %352, %cst_83 {dimension_numbers = #tpu.dot_dimension_numbers<[1], [0], [0], [1], [0, 0, 1, 1], [], []>} : vector<4x36xbf16>, vector<36x512xbf16>, vector<4x512xf32> -> vector<4x512xf32>
    %cst_84 = arith.constant dense<0.000000e+00> : vector<4xf32>
    %354 = vector.multi_reduction <add>, %353, %cst_84 [1] : vector<4x512xf32> to vector<4xf32>
    %355 = vector.shape_cast %354 : vector<4xf32> to vector<4x1xf32>
    %356 = arith.mulf %353, %353 : vector<4x512xf32>
    %cst_85 = arith.constant dense<0.000000e+00> : vector<4xf32>
    %357 = vector.multi_reduction <add>, %356, %cst_85 [1] : vector<4x512xf32> to vector<4xf32>
    %358 = vector.shape_cast %357 : vector<4xf32> to vector<4x1xf32>
    %cst_86 = arith.constant 0.001953125 : f32
    %359 = vector.broadcast %cst_86 : f32 to vector<4x1xf32>
    %360 = arith.mulf %355, %359 : vector<4x1xf32>
    %cst_87 = arith.constant 0.001953125 : f32
    %361 = vector.broadcast %cst_87 : f32 to vector<4x1xf32>
    %362 = arith.mulf %358, %361 : vector<4x1xf32>
    %363 = arith.mulf %360, %360 : vector<4x1xf32>
    %364 = arith.subf %362, %363 : vector<4x1xf32>
    %c0_88 = arith.constant 0 : index
    %c0_89 = arith.constant 0 : index
    %365 = vector.load %arg7[%c0_88, %c0_89] : memref<4x1xf32, #tpu.memory_space<vmem>>, vector<4x1xf32>
    %cst_90 = arith.constant 9.99999974E-6 : f32
    %366 = vector.broadcast %cst_90 : f32 to vector<4x1xf32>
    %367 = arith.addf %364, %366 : vector<4x1xf32>
    %368 = math.rsqrt %367 : vector<4x1xf32>
    %369 = arith.mulf %365, %368 : vector<4x1xf32>
    %370 = vector.broadcast %369 : vector<4x1xf32> to vector<4x512xf32>
    %371 = arith.mulf %353, %370 : vector<4x512xf32>
    %c0_91 = arith.constant 0 : index
    %c0_92 = arith.constant 0 : index
    %372 = vector.load %arg8[%c0_91, %c0_92] : memref<4x1xf32, #tpu.memory_space<vmem>>, vector<4x1xf32>
    %373 = arith.mulf %360, %369 : vector<4x1xf32>
    %374 = arith.subf %372, %373 : vector<4x1xf32>
    %375 = vector.broadcast %374 : vector<4x1xf32> to vector<4x512xf32>
    %376 = arith.addf %371, %375 : vector<4x512xf32>
    %377 = arith.addf %0, %376 : vector<4x512xf32>
    %cst_93 = arith.constant 2.000000e-01 : f32
    %378 = vector.broadcast %cst_93 : f32 to vector<4x512xf32>
    %379 = arith.mulf %378, %377 : vector<4x512xf32>
    %380 = arith.maximumf %377, %379 : vector<4x512xf32>
    %c0_94 = arith.constant 0 : index
    %c0_95 = arith.constant 0 : index
    %381 = vector.load %arg9[%c0_94, %c0_95] : memref<8x4xbf16, #tpu.memory_space<vmem>>, vector<8x4xbf16>
    %382 = arith.truncf %380 : vector<4x512xf32> to vector<4x512xbf16>
    %cst_96 = arith.constant dense<0.000000e+00> : vector<8x512xf32>
    %383 = tpu.matmul %381, %382, %cst_96 {dimension_numbers = #tpu.dot_dimension_numbers<[1], [0], [0], [1], [0, 0, 1, 1], [], []>} : vector<8x4xbf16>, vector<4x512xbf16>, vector<8x512xf32> -> vector<8x512xf32>
    %cst_97 = arith.constant dense<0.000000e+00> : vector<8xf32>
    %384 = vector.multi_reduction <add>, %383, %cst_97 [1] : vector<8x512xf32> to vector<8xf32>
    %385 = vector.shape_cast %384 : vector<8xf32> to vector<8x1xf32>
    %386 = arith.mulf %383, %383 : vector<8x512xf32>
    %cst_98 = arith.constant dense<0.000000e+00> : vector<8xf32>
    %387 = vector.multi_reduction <add>, %386, %cst_98 [1] : vector<8x512xf32> to vector<8xf32>
    %388 = vector.shape_cast %387 : vector<8xf32> to vector<8x1xf32>
    %cst_99 = arith.constant 0.001953125 : f32
    %389 = vector.broadcast %cst_99 : f32 to vector<8x1xf32>
    %390 = arith.mulf %385, %389 : vector<8x1xf32>
    %cst_100 = arith.constant 0.001953125 : f32
    %391 = vector.broadcast %cst_100 : f32 to vector<8x1xf32>
    %392 = arith.mulf %388, %391 : vector<8x1xf32>
    %393 = arith.mulf %390, %390 : vector<8x1xf32>
    %394 = arith.subf %392, %393 : vector<8x1xf32>
    %c0_101 = arith.constant 0 : index
    %c0_102 = arith.constant 0 : index
    %395 = vector.load %arg10[%c0_101, %c0_102] : memref<8x1xf32, #tpu.memory_space<vmem>>, vector<8x1xf32>
    %cst_103 = arith.constant 9.99999974E-6 : f32
    %396 = vector.broadcast %cst_103 : f32 to vector<8x1xf32>
    %397 = arith.addf %394, %396 : vector<8x1xf32>
    %398 = math.rsqrt %397 : vector<8x1xf32>
    %399 = arith.mulf %395, %398 : vector<8x1xf32>
    %400 = vector.broadcast %399 : vector<8x1xf32> to vector<8x512xf32>
    %401 = arith.mulf %383, %400 : vector<8x512xf32>
    %c0_104 = arith.constant 0 : index
    %c0_105 = arith.constant 0 : index
    %402 = vector.load %arg11[%c0_104, %c0_105] : memref<8x1xf32, #tpu.memory_space<vmem>>, vector<8x1xf32>
    %403 = arith.mulf %390, %399 : vector<8x1xf32>
    %404 = arith.subf %402, %403 : vector<8x1xf32>
    %405 = vector.broadcast %404 : vector<8x1xf32> to vector<8x512xf32>
    %406 = arith.addf %401, %405 : vector<8x512xf32>
    %cst_106 = arith.constant 2.000000e-01 : f32
    %407 = vector.broadcast %cst_106 : f32 to vector<8x512xf32>
    %408 = arith.mulf %407, %406 : vector<8x512xf32>
    %409 = arith.maximumf %406, %408 : vector<8x512xf32>
    %c0_107 = arith.constant 0 : index
    %c0_108 = arith.constant 0 : index
    %410 = vector.load %arg12[%c0_107, %c0_108] : memref<8x512xf32, #tpu.memory_space<vmem>>, vector<8x512xf32>
    tpu.vector_store %arg12[%c0_107, %c0_108], %409 {strides = array<i32>} : memref<8x512xf32, #tpu.memory_space<vmem>>, vector<8x512xf32>,
    return
  }
}

</mosaic_0001>

<bundles_post_ra>
// kernel: tpu_custom_call.1
= control target key start
LH: loop header
LB: loop body
LE: loop exit
PB: predicated region body
PF: predicated region fallthrough
CT: control target
= control target key end

     0   :  { %vm2971_vm0 = vcmask 1041408   ;;  %v2981_v6 = vmov 0   ;;  %s2957_s0 = inlined_call_operand.vmem [shape: f32[4,512], index: 0, kind: input, shape index: {}]   ;;  %s2958_s1 = inlined_call_operand.vmem [shape: s32[1,512], index: 1, kind: input, shape index: {}]   ;;  %s2959_s2 = inlined_call_operand.vmem [shape: s32[1,512], index: 2, kind: input, shape index: {}]   ;;  %s2960_s3 = inlined_call_operand.vmem [shape: bf16[4,4], index: 3, kind: input, shape index: {}]   ;;  %s2961_s4 = inlined_call_operand.vmem [shape: f32[4,1], index: 4, kind: input, shape index: {}]   ;;  %s2962_s5 = inlined_call_operand.vmem [shape: f32[4,1], index: 5, kind: input, shape index: {}]   ;;  %s2963_s6 = inlined_call_operand.vmem [shape: bf16[4,36], index: 6, kind: input, shape index: {}]   ;;  %s2964_s7 = inlined_call_operand.vmem [shape: f32[4,1], index: 7, kind: input, shape index: {}]   ;;  %s2965_s8 = inlined_call_operand.vmem [shape: f32[4,1], index: 8, kind: input, shape index: {}]   ;;  %s2966_s9 = inlined_call_operand.vmem [shape: bf16[8,4], index: 9, kind: input, shape index: {}]   ;;  %s2967_s10 = inlined_call_operand.vmem [shape: f32[8,1], index: 10, kind: input, shape index: {}]   ;;  %s2968_s11 = inlined_call_operand.vmem [shape: f32[8,1], index: 11, kind: input, shape index: {}]   ;;  %s2969_s12 = inlined_call_operand.hbm [shape: f32[8,512], index: 12, kind: output, shape index: {}]  }
   0x1   :  { %v43_v0 = vld [vmem:[%s2957_s0] sm:$0xff]  ;;  %v44_v1 = vld [vmem:[%s2957_s0 + $0x8] sm:$0xff]  ;;  %107 = vmatprep.mubr.bf16.mxu0 %v2981_v6 }
   0x2   :  { %v50_v2 = vcombine.high %v43_v0, %v43_v0  ;;  %v51_v3 = vcombine.high %v44_v1, %v44_v1  ;;  %v54_v4 = vpack.c.bf16 %v43_v0, %v43_v0  ;;  %v56_v5 = vpack.c.bf16 %v44_v1, %v44_v1 }
   0x3   :  { %17 = vsyncpa [#allocation3], 0  ;;  %148 = vmatprep.mubr.bf16.mxu1 %v2981_v6  ;;  %1615 = vset.pattern.permute.xlu1 %v2981_v6  ;;  %v47_v11 = vld [vmem:[%s2960_s3] sm:$0x3]  ;;  %vm2970_vm1 = vcmask 31744   ;;  %vm2972_vm2 = vcmask 1043456  }
   0x4   :  { %v55_v7 = vpack.c.bf16 %v50_v2, %v50_v2  ;;  %v57_v8 = vpack.c.bf16 %v51_v3, %v51_v3  ;;  %v64_v9 = vsel %vm2971_vm0, %v54_v4, 0  ;;  %v70_v10 = vsel %vm2971_vm0, %v56_v5, 0  ;;  %1616 = vset.pattern.permute.xlu0 %v2981_v6  ;;  %v184_v45 = vld [vmem:[%s2961_s4] sm:$0xf]  ;;  %s1652_s4 = smov 17   ;;  %s1654_s30 = smov 113  }
   0x5   :  { %v197_v48 = vld [vmem:[%s2962_s5] sm:$0xf]  ;;  %s1653_s5 = smov 15   ;;  %s1655_s13 = smov 111  }
   0x6   :  { %1568 = vmatprep.subr.msk.bf16.mxu0 %vm2971_vm0, %v55_v7  ;;  %1570 = vmatprep.subr.msk.bf16.mxu1 %vm2971_vm0, %v57_v8  ;;  %s1656_s14 = smov 16   ;;  %s1657_s15 = smov 112   ;;  %v1813_v5 = vld [vmem:[%s2958_s1] sm:$0xf] }
   0x7   :  { %76 = vmatpush1.bf16.msra.mxu0 %v64_v9  ;;  %117 = vmatpush1.bf16.msra.mxu1 %v70_v10  ;;  %s1658_s16 = smov 1   ;;  %s1659_s17 = smov 127   ;;  %v1818_v7 = vld [vmem:[%s2959_s2] sm:$0xf]  ;;  %vm217_vm3 = vcmp.ge.s32.totalorder %v1813_v5, 1  ;;  %vm2973_vm4 = vcmp.lt.s32.totalorder %v1813_v5, 16 }
   0x8   :  { %vm221_vm5 = vcmp.ge.s32.totalorder %v1818_v7, 1  ;;  %vm2975_vm6 = vcmp.lt.s32.totalorder %v1818_v7, 16  ;;  %vm1826_vm7 = vmand %vm217_vm3, %vm2973_vm4  ;;  %vm2980_vm9 = vcmp.eq.s32.totalorder %v1818_v7, 15  ;;  %vm2977_vm10 = vcmp.eq.s32.totalorder %v1813_v5, 15 }
   0x9   :  { %vm1832_vm8 = vmand %vm221_vm5, %vm2975_vm6  ;;  %vm2974_vm11 = vcmp.ge.s32.totalorder %v1818_v7, 0  ;;  %vm531_vm12 = vcmp.lt.s32.totalorder %v1818_v7, 15  ;;  %vm2976_vm13 = vcmp.eq.s32.totalorder %v1818_v7, 0  ;;  %vm828_vm4 = vcmp.lt.s32.totalorder %v1813_v5, 15 }
   0xa   :  { %1569 = vmatmul.mubr.msk.bf16.vlgmr.msra.gmra.mrb[0].mxu0 %vm2970_vm1, %v47_v11  ;;  %1571 = vmatmul.mubr.msk.bf16.vlgmr.msra.gmra.mrb[0].mxu1 %vm2970_vm1, %v47_v11  ;;  %vm1849_vm15 = vmand %vm1826_vm7, %vm2980_vm9  ;;  %vm2979_vm6 = vcmp.eq.s32.totalorder %v1813_v5, 0 }
   0xb   :  { %1276 = vmatprep.mubr.bf16.mxu0 %v2981_v6  ;;  %1317 = vmatprep.mubr.bf16.mxu1 %v2981_v6  ;;  %vm1857_vm3 = vmand %vm2977_vm10, %vm1832_vm8 }
   0xc   :  { %vm1863_vm5 = vmand %vm2974_vm11, %vm531_vm12 }
   0xd   :  { %vm1871_vm1 = vmand %vm2977_vm10, %vm2980_vm9 }
   0xe   :  { %vm1879_vm0 = vmand %vm1826_vm7, %vm2976_vm13 }
   0xf   :  { %vm1893_vm11 = vmand %vm2977_vm10, %vm2976_vm13 }
  0x10   :  { %vm1902_vm14 = vmand %vm2977_vm10, %vm1863_vm5 }
  0x11   :  { %vm1916_vm13 = vmand %vm2979_vm6, %vm1832_vm8 }
  0x12   :  { %vm1924_vm10 = vmand %vm2979_vm6, %vm2980_vm9 }
  0x13   :  { %vm3035_vm6 = vmand %vm1826_vm7, %vm1832_vm8 }
  0xdd   :  { %v109_v12 = vpop.f32.mrb[0].mxu0  ;;  %v150_v13 = vpop.f32.mrb[0].mxu1 }
  0xde   :  { %v158_v14 = vsel %vm2972_vm2, %v109_v12, 0.0  ;;  %v167_v15 = vmul.f32 %v109_v12, %v109_v12  ;;  %v169_v16 = vmul.f32 %v150_v13, %v150_v13  ;;  %v111_v17 = vpop.f32.mrb[1].mxu0  ;;  %v152_v18 = vpop.f32.mrb[1].mxu1  ;;  %v161_v23 = vsel %vm2972_vm2, %v150_v13, 0.0 }
  0xdf   :  { %v159_v19 = vsel %vm2972_vm2, %v111_v17, 0.0  ;;  %v168_v20 = vmul.f32 %v111_v17, %v111_v17  ;;  %v113_v21 = vpop.f32.mrb[2].mxu0  ;;  %v154_v22 = vpop.f32.mrb[2].mxu1  ;;  %v170_v29 = vmul.f32 %v152_v18, %v152_v18  ;;  %v163_v33 = vsel %vm2972_vm2, %v152_v18, 0.0 }
  0xe0   :  { %v171_v24 = vsel %vm2972_vm2, %v167_v15, 0.0  ;;  %v114_v25 = vpop.f32.mrb[3].mxu0  ;;  %v155_v26 = vpop.f32.mrb[3].mxu1  ;;  %v160_v27 = vadd.f32 %v159_v19, %v158_v14  ;;  %v174_v30 = vsel %vm2972_vm2, %v169_v16, 0.0  ;;  %v251_v14 = vlaneseq }
  0xe1   :  { %v172_v28 = vsel %vm2972_vm2, %v168_v20, 0.0  ;;  %v176_v36 = vsel %vm2972_vm2, %v170_v29, 0.0  ;;  %vm2978_vm2 = vcmp.ge.s32.totalorder %v1813_v5, 0 }
  0xe2   :  { %v162_v31 = vadd.f32 %v161_v23, %v160_v27  ;;  %v173_v32 = vadd.f32 %v172_v28, %v171_v24  ;;  %vm1908_vm12 = vmand %vm2978_vm2, %vm828_vm4  ;;  %v1660_v24 = vmov 0.0  }
  0xe3   :  { %vm1938_vm2 = vmand %vm1908_vm12, %vm2980_vm9  ;;  %v1948_v25 = vsel %vm3035_vm6, 1.0, %v1660_v24  ;;  %v1953_v26 = vsel %vm1849_vm15, 1.0, %v1660_v24  ;;  %v1958_v27 = vsel %vm1857_vm3, 1.0, %v1660_v24  ;;  %v1963_v28 = vsel %vm1871_vm1, 1.0, %v1660_v24 }
  0xe4   :  { %v164_v34 = vadd.f32 %v163_v33, %v162_v31  ;;  %v175_v35 = vadd.f32 %v174_v30, %v173_v32  ;;  %3036 = vst [vmem:[#allocation9_spill] sm:$0xff] %v1958_v27  ;;  %3037 = vst [vmem:[#allocation10_spill] sm:$0xff] %v1963_v28  ;;  %vm3038_vm9 = vcmp.eq.s32.totalorder %v1818_v7, 0  ;;  %vm3039_vm6 = vcmp.eq.s32.totalorder %v1813_v5, 0 }
  0xe5   :  { %vm1969_vm4 = vmand %vm3039_vm6, %vm3038_vm9  ;;  %v1976_v30 = vsel %vm1879_vm0, 1.0, %v1660_v24  ;;  %v1989_v32 = vsel %vm1893_vm11, 1.0, %v1660_v24  ;;  %vm3046_vm15 = vcmp.lt.s32.totalorder %v1818_v7, 16  ;;  %vm3047_vm11 = vcmp.ge.s32.totalorder %v1818_v7, 0 }
  0xe6   :  { %165 = vadd.xlane.f32.xlu0 %v164_v34  ;;  %v177_v37 = vadd.f32 %v176_v36, %v175_v35  ;;  %vm3042_vm1 = vmand %vm1826_vm7, %vm1863_vm5  ;;  %v2004_v35 = vsel %vm1902_vm14, 1.0, %v1660_v24  ;;  %vm3050_vm14 = vcmp.eq.s32.totalorder %v1818_v7, 0 }
  0xe7   :  { %v1984_v31 = vsel %vm3042_vm1, 1.0, %v1660_v24  ;;  %vm3043_vm0 = vmmov %vm3039_vm6 }
  0xe8   :  { %vm1997_vm9 = vmand %vm3043_vm0, %vm1863_vm5 }
  0xe9   :  { %vm2010_vm3 = vmand %vm3047_vm11, %vm3046_vm15  ;;  %vm3053_vm15 = vcmp.eq.s32.totalorder %v1813_v5, 15 }
  0xea   :  { %178 = vadd.xlane.f32.xlu0 %v177_v37  ;;  %vm2024_vm6 = vmand %vm1908_vm12, %vm3050_vm14  ;;  %vm3060_vm14 = vcmp.ge.s32.totalorder %v1813_v5, 0 }
  0xeb   :  { %vm1023_vm1 = vmand %vm1908_vm12, %vm1863_vm5 }
  0xec   :  { %vm431_vm0 = vmand %vm1826_vm7, %vm2010_vm3 }
  0xed   :  { %vm2067_vm11 = vmand %vm3053_vm15, %vm2010_vm3 }
  0xee   :  { %v2161_v8 = vsel %vm2067_vm11, 1.0, %v1660_v24 }
 0x173   :  { %v166_v38 = vpop.xlane.xlu0 %165 }
 0x174   :  { %v180_v39 = vmul.f32 0.001953125, %v166_v38 }
 0x176   :  { %v182_v41 = vmul.f32 %v180_v39, %v180_v39 }
 0x177   :  { %v179_v40 = vpop.xlane.xlu0 %178 }
 0x178   :  { %v181_v42 = vmul.f32 0.001953125, %v179_v40 }
 0x17a   :  { %v183_v43 = vsub.f32 %v181_v42, %v182_v41 }
 0x17c   :  { %v185_v44 = vadd.f32 1e-05, %v183_v43 }
 0x17e   :  { %1619 = vrsqrt.f32 %v185_v44 }
 0x188   :  { %v1620_v46 = vpop.eup %1619 }
 0x189   :  { %v187_v47 = vmul.f32 %v1620_v46, %v184_v45 }
 0x18b   :  { %190 = vperm.xlu1 %1615, %v187_v47   ;;  %v198_v49 = vmul.f32 %v187_v47, %v180_v39 }
 0x18d   :  { %v199_v50 = vsub.f32 %v197_v48, %v198_v49 }
 0x18f   :  { %202 = vperm.xlu1 %1615, %v199_v50  }
 0x20a   :  { %v191_v51 = vpop.permute.xlu1 %190 }
 0x20b   :  { %v193_v52 = vmul.f32 %v191_v51, %v109_v12  ;;  %v194_v53 = vmul.f32 %v191_v51, %v111_v17  ;;  %v195_v54 = vmul.f32 %v191_v51, %v150_v13  ;;  %v196_v0 = vmul.f32 %v191_v51, %v152_v18 }
 0x20c   :  { %v252_v18 = vshrl.u32 %v251_v14, 7  ;;  %v2138_v14 = vsel %vm1023_vm1, 1.0, %v1660_v24 }
 0x20e   :  { %v203_v55 = vpop.permute.xlu1 %202  ;;  %v1932_v22 = vsub.s32 1, %v252_v18  ;;  %v1991_v33 = vsub.s32 0, %v252_v18 }
 0x20f   :  { %v205_v56 = vadd.f32 %v203_v55, %v193_v52  ;;  %v206_v57 = vadd.f32 %v203_v55, %v194_v53  ;;  %v207_v58 = vadd.f32 %v203_v55, %v195_v54  ;;  %v208_v1 = vadd.f32 %v203_v55, %v196_v0 }
 0x210   :  { %v258_v37 = vrot.slane %v1948_v25, %v1932_v22  ;;  %v577_v38 = vrot.slane %v1953_v26, %v1932_v22  ;;  %v906_v39 = vrot.slane %v1958_v27, %v1932_v22  ;;  %v1130_v41 = vrot.slane %v1963_v28, %v1932_v22 }
 0x211   :  { %v209_v59 = vmul.f32 0.2, %v205_v56  ;;  %v210_v60 = vmul.f32 0.2, %v206_v57  ;;  %v211_v61 = vmul.f32 0.2, %v207_v58  ;;  %v308_v42 = vrot.slane %v1976_v30, %v1932_v22 }
 0x212   :  { %v212_v3 = vmul.f32 0.2, %v208_v1  ;;  %v545_v43 = vrot.slane %v1984_v31, %v1932_v22  ;;  %v938_v44 = vrot.slane %v1989_v32, %v1932_v22  ;;  %v1098_v45 = vrot.slane %v2004_v35, %v1932_v22 }
 0x213   :  { %v1762_v62 = vmax.f32 %v205_v56, %v209_v59  ;;  %v1764_v63 = vmax.f32 %v206_v57, %v210_v60  ;;  %v1770_v2 = vmax.f32 %v207_v58, %v211_v61  ;;  %v2061_v52 = vsel %vm1916_vm13, 1.0, %v1660_v24  ;;  %vm3056_vm13 = vmand %vm1908_vm12, %vm1832_vm8 }
 0x214   :  { %v1777_v4 = vmax.f32 %v208_v1, %v212_v3  ;;  %v2078_v56 = vsel %vm1924_vm10, 1.0, %v1660_v24  ;;  %v2086_v57 = vsel %vm3056_vm13, 1.0, %v1660_v24  ;;  %v2091_v58 = vsel %vm1938_vm2, 1.0, %v1660_v24 }
 0x215   :  { %3005 = vst [vmem:[#allocation5_spill] sm:$0xff] %v1762_v62  ;;  %3006 = vst [vmem:[#allocation6_spill] sm:$0xff] %v1764_v63  ;;  %237 = vrot.lane.b32.xlu1 %v1764_v63, %s1652_s4  ;;  %235 = vrot.lane.b32.xlu0 %v1762_v62, %s1652_s4  ;;  %v2096_v59 = vsel %vm1969_vm4, 1.0, %v1660_v24  ;;  %vm3059_vm10 = vcmp.lt.s32.totalorder %v1813_v5, 16  ;;  %v2109_v61 = vsel %vm1997_vm9, 1.0, %v1660_v24  ;;  %v2114_v0 = vsel %vm2024_vm6, 1.0, %v1660_v24 }
 0x216   :  { %3007 = vst [vmem:[#allocation7_spill] sm:$0xff] %v1770_v2  ;;  %3008 = vst [vmem:[#allocation8_spill] sm:$0xff] %v1777_v4  ;;  %v2116_v1 = vsub.s32 2, %v252_v18  ;;  %v2118_v3 = vsub.s32 3, %v252_v18  ;;  %vm3063_vm2 = vcmp.eq.s32.totalorder %v1813_v5, 0  ;;  %v2146_v5 = vsel %vm431_vm0, 1.0, %v1660_v24 }
 0x217   :  { %3057 = vst [vmem:[#allocation11_spill] sm:$0xff] %v2086_v57  ;;  %3058 = vst [vmem:[#allocation12_spill] sm:$0xff] %v2091_v58  ;;  %v874_v34 = vrot.slane %v2114_v0, %v1932_v22  ;;  %vm3067_vm6 = vcmp.eq.s32.totalorder %v1818_v7, 15  ;;  %vm3070_vm0 = vcmp.eq.s32.totalorder %v1818_v7, 0 }
 0x218   :  { %vm2102_vm15 = vmand %vm3060_vm14, %vm3059_vm10  ;;  %vm443_vm10 = vcmask 130048   ;;  %vm492_vm14 = vcmask 916480  }
 0x219   :  { %285 = vrot.lane.b32.xlu1 %v1762_v62, %s1653_s5  ;;  %336 = vrot.lane.b32.xlu0 %v1770_v2, %s1654_s30  ;;  %vm2124_vm4 = vmand %vm3063_vm2, %vm2010_vm3  ;;  %vm725_vm2 = vcmask 1039360  }
 0x21a   :  { %vm959_vm9 = vmand %vm1908_vm12, %vm2010_vm3  ;;  %v2208_v16 = vsel %vm2124_vm4, 1.0, %v1660_v24  ;;  %vm390_vm12 = vcmask 908288   ;;  %vm340_vm3 = vcmask 924672   ;;  %vm3127_vm4 = vcmask 1043456  }
 0x21b   :  { %vm664_vm7 = vmand %vm2102_vm15, %vm1832_vm8  ;;  %v2224_v10 = vsel %vm959_vm9, 1.0, %v1660_v24  ;;  %vm291_vm8 = vcmask 121856  }
 0x21c   :  { %vm2183_vm1 = vmand %vm2102_vm15, %vm3067_vm6  ;;  %v2232_v12 = vsel %vm664_vm7, 1.0, %v1660_v24 }
 0x21d   :  { %287 = vrot.lane.b32.xlu1 %v1764_v63, %s1653_s5  ;;  %386 = vrot.lane.b32.xlu0 %v1770_v2, %s1655_s13  ;;  %vm714_vm11 = vmand %vm2102_vm15, %vm3070_vm0  ;;  %v2245_v23 = vsel %vm2183_vm1, 1.0, %v1660_v24 }
 0x21e   :  { %vm764_vm13 = vmand %vm2102_vm15, %vm1863_vm5  ;;  %v2248_v9 = vsel %vm714_vm11, 1.0, %v1660_v24  ;;  %vm241_vm5 = vcmask 138240   ;;  %vm676_vm15 = vcmask 7168  }
 0x21f   :  { %v2257_v29 = vsel %vm764_vm13, 1.0, %v1660_v24  ;;  %vm3128_vm9 = vmmov %vm3127_vm4 }
 0x220   :  { %vm3157_vm7 = vmmov %vm3127_vm4 }
 0x221   :  { %229 = vrot.lane.b32.xlu1 %v1777_v4, %s1652_s4  ;;  %439 = vrot.lane.b32.xlu0 %v1764_v63, %s1656_s14  ;;  %vm3176_vm6 = vmmov %vm3127_vm4 }
 0x222   :  { %vm3190_vm1 = vmmov %vm3127_vm4 }
 0x223   :  { %vm3191_vm0 = vmmov %vm3190_vm1 }
 0x224   :  { %vm3201_vm11 = vmmov %vm3191_vm0 }
 0x225   :  { %282 = vrot.lane.b32.xlu1 %v1777_v4, %s1653_s5  ;;  %488 = vrot.lane.b32.xlu0 %v1770_v2, %s1657_s15  ;;  %vm3202_vm13 = vmmov %vm3191_vm0 }
 0x229   :  { %334 = vrot.lane.b32.xlu1 %v1764_v63, %s1654_s30  ;;  %672 = vrot.lane.b32.xlu0 %v1764_v63, %s1658_s16 }
 0x22d   :  { %384 = vrot.lane.b32.xlu1 %v1764_v63, %s1655_s13  ;;  %721 = vrot.lane.b32.xlu0 %v1770_v2, %s1659_s17 }
 0x231   :  { %437 = vrot.lane.b32.xlu1 %v1762_v62, %s1656_s14  ;;  %289 = vrot.lane.b32.xlu0 %v1770_v2, %s1653_s5 }
 0x235   :  { %486 = vrot.lane.b32.xlu1 %v1764_v63, %s1657_s15  ;;  %382 = vrot.lane.b32.xlu0 %v1762_v62, %s1655_s13 }
 0x239   :  { %670 = vrot.lane.b32.xlu1 %v1762_v62, %s1658_s16  ;;  %484 = vrot.lane.b32.xlu0 %v1762_v62, %s1657_s15 }
 0x23d   :  { %719 = vrot.lane.b32.xlu1 %v1764_v63, %s1659_s17  ;;  %717 = vrot.lane.b32.xlu0 %v1762_v62, %s1659_s17 }
 0x241   :  { %239 = vrot.lane.b32.xlu1 %v1770_v2, %s1652_s4  ;;  %388 = vrot.lane.b32.xlu0 %v1777_v4, %s1655_s13 }
 0x245   :  { %332 = vrot.lane.b32.xlu1 %v1762_v62, %s1654_s30  ;;  %490 = vrot.lane.b32.xlu0 %v1777_v4, %s1657_s15 }
 0x249   :  { %434 = vrot.lane.b32.xlu1 %v1777_v4, %s1656_s14  ;;  %723 = vrot.lane.b32.xlu0 %v1777_v4, %s1659_s17 }
 0x24d   :  { %667 = vrot.lane.b32.xlu1 %v1777_v4, %s1658_s16 }
 0x251   :  { %338 = vrot.lane.b32.xlu1 %v1777_v4, %s1654_s30 }
 0x255   :  { %441 = vrot.lane.b32.xlu1 %v1770_v2, %s1656_s14 }
 0x259   :  { %674 = vrot.lane.b32.xlu1 %v1770_v2, %s1658_s16 }
 0x287   :  { %v2071_v54 = vpop.permute.xlu1 %237  ;;  %v2073_v55 = vpop.permute.xlu0 %235 }
 0x288   :  { %v242_v13 = vsel %vm241_vm5, %v2073_v55, %v2071_v54 }
 0x289   :  { %v272_v46 = vmul.f32 %v258_v37, %v242_v13  ;;  %v591_v15 = vmul.f32 %v577_v38, %v242_v13  ;;  %v920_v53 = vmul.f32 %v906_v39, %v242_v13  ;;  %v2423_v37 = vmul.f32 %v1130_v41, %v242_v13 }
 0x28a   :  { %v3075_v41 = vrot.slane %v2138_v14, %v1932_v22 }
 0x28b   :  { %v2167_v18 = vpop.permute.xlu1 %285  ;;  %v2169_v20 = vpop.permute.xlu0 %336 }
 0x28c   :  { %3066 = vst [vmem:[#allocation13_spill] sm:$0xff] %v2169_v20 }
 0x28f   :  { %v2234_v7 = vpop.permute.xlu1 %287  ;;  %v2236_v6 = vpop.permute.xlu0 %386 }
 0x290   :  { %3071 = vst [vmem:[#allocation14_spill] sm:$0xff] %v2236_v6  ;;  %v292_v60 = vsel %vm291_vm8, %v2167_v18, %v2234_v7 }
 0x291   :  { %v322_v47 = vmul.f32 %v308_v42, %v292_v60  ;;  %v559_v40 = vmul.f32 %v545_v43, %v292_v60  ;;  %v952_v38 = vmul.f32 %v938_v44, %v292_v60 }
 0x293   :  { %v2275_v36 = vpop.permute.xlu1 %229  ;;  %v2277_v11 = vpop.permute.xlu0 %439  ;;  %v326_v42 = vadd.f32 %v322_v47, %v272_v46  ;;  %v595_v4 = vadd.f32 %v591_v15, %v559_v40  ;;  %v3077_v46 = vrot.slane %v1948_v25, %v1991_v33  ;;  %v3083_v40 = vrot.slane %v2086_v57, %v1932_v22 }
 0x294   :  { %3072 = vst [vmem:[#allocation15_spill] sm:$0xff] %v2277_v11  ;;  %v249_v43 = vsel %vm241_vm5, %v2275_v36, %v2073_v55 }
 0x295   :  { %v271_v47 = vmul.f32 %v3077_v46, %v249_v43 }
 0x297   :  { %v2311_v21 = vpop.permute.xlu1 %282  ;;  %v2313_v24 = vpop.permute.xlu0 %488 }
 0x298   :  { %v299_v51 = vsel %vm291_vm8, %v2311_v21, %v2167_v18  ;;  %v1112_v18 = vmul.f32 %v1098_v45, %v292_v60  ;;  %v3078_v45 = vrot.slane %v1976_v30, %v1991_v33 }
 0x29a   :  { %v321_v60 = vmul.f32 %v3078_v45, %v299_v51  ;;  %v3084_v45 = vrot.slane %v2091_v58, %v1932_v22  ;;  %v3092_v58 = vrot.slane %v2109_v61, %v1932_v22 }
 0x29b   :  { %v2347_v48 = vpop.permute.xlu1 %334  ;;  %v2349_v49 = vpop.permute.xlu0 %672 }
 0x29c   :  { %3073 = vst [vmem:[#allocation16_spill] sm:$0xff] %v2347_v48  ;;  %3074 = vst [vmem:[#allocation17_spill] sm:$0xff] %v2349_v49  ;;  %v342_v55 = vsel %vm340_vm3, %v2347_v48, %v2169_v20  ;;  %v3081_v20 = vrot.slane %v1958_v27, %v1991_v33  ;;  %v2491_v57 = vadd.f32 %v321_v60, %v271_v47 }
 0x29d   :  { %v856_v46 = vmul.f32 %v3083_v40, %v342_v55  ;;  %v1080_v48 = vmul.f32 %v3084_v45, %v342_v55  ;;  %v3091_v40 = vrot.slane %v2061_v52, %v1932_v22 }
 0x29e   :  { %v2457_v15 = vmul.f32 %v3081_v20, %v249_v43  ;;  %v3089_v20 = vrot.slane %v2004_v35, %v1991_v33  ;;  %3093 = vst [vmem:[#allocation23_spill] sm:$0xff] %v2491_v57 }
 0x29f   :  { %v385_v17 = vpop.permute.xlu1 %384  ;;  %v2388_v50 = vpop.permute.xlu0 %721  ;;  %v372_v45 = vmul.f32 %v3091_v40, %v342_v55 }
 0x2a0   :  { %v392_v19 = vsel %vm390_vm12, %v385_v17, %v2236_v6  ;;  %3082 = vst [vmem:[#allocation19_spill] sm:$0xff] %v2457_v15  ;;  %v2478_v15 = vmul.f32 %v3089_v20, %v299_v51  ;;  %v3094_v20 = vrot.slane %v2096_v59, %v1932_v22 }
 0x2a1   :  { %v888_v39 = vmul.f32 %v874_v34, %v392_v19  ;;  %v1048_v13 = vmul.f32 %v3075_v41, %v392_v19  ;;  %v3079_v34 = vrot.slane %v1984_v31, %v1991_v33  ;;  %v3080_v41 = vrot.slane %v1953_v26, %v1991_v33 }
 0x2a2   :  { %3090 = vst [vmem:[#allocation22_spill] sm:$0xff] %v2478_v15  ;;  %v422_v40 = vmul.f32 %v3094_v20, %v392_v19  ;;  %v376_v60 = vadd.f32 %v372_v45, %v326_v42  ;;  %v3099_v20 = vrot.slane %v2161_v8, %v1932_v22  ;;  %v3100_v45 = vrot.slane %v1976_v30, %v2116_v1 }
 0x2a3   :  { %v2440_v2 = vpop.permute.xlu1 %437  ;;  %v290_v44 = vpop.permute.xlu0 %289  ;;  %v558_v62 = vmul.f32 %v3079_v34, %v299_v51  ;;  %v590_v63 = vmul.f32 %v3080_v41, %v249_v43  ;;  %v3085_v34 = vrot.slane %v1963_v28, %v1991_v33  ;;  %v3087_v41 = vrot.slane %v1989_v32, %v1991_v33 }
 0x2a4   :  { %3076 = vst [vmem:[#allocation18_spill] sm:$0xff] %v2440_v2  ;;  %v623_v28 = vmul.f32 %v3092_v58, %v392_v19  ;;  %v3098_v19 = vrot.slane %v2146_v5, %v1932_v22 }
 0x2a5   :  { %v2468_v6 = vmul.f32 %v3085_v34, %v249_v43  ;;  %v2473_v27 = vmul.f32 %v3087_v41, %v299_v51  ;;  %v892_v43 = vadd.f32 %v888_v39, %v856_v46  ;;  %v1084_v34 = vadd.f32 %v1080_v48, %v1048_v13 }
 0x2a6   :  { %v444_v41 = vsel %vm443_vm10, %v2440_v2, %v2277_v11  ;;  %v594_v51 = vadd.f32 %v590_v63, %v558_v62  ;;  %v3095_v48 = vrot.slane %v2078_v56, %v1932_v22  ;;  %v293_v39 = vsel %vm291_vm8, %v2234_v7, %v290_v44 }
 0x2a7   :  { %3086 = vst [vmem:[#allocation20_spill] sm:$0xff] %v2468_v6  ;;  %3088 = vst [vmem:[#allocation21_spill] sm:$0xff] %v2473_v27  ;;  %v487_v6 = vpop.permute.xlu1 %486  ;;  %v2489_v27 = vpop.permute.xlu0 %382  ;;  %v3096_v13 = vrot.slane %v2208_v16, %v1932_v22  ;;  %v3097_v62 = vrot.slane %v2224_v10, %v1932_v22  ;;  %v474_v46 = vmul.f32 %v3098_v19, %v444_v41 }
 0x2a8   :  { %v494_v15 = vsel %vm492_vm14, %v487_v6, %v2313_v24  ;;  %v655_v58 = vmul.f32 %v3095_v48, %v342_v55  ;;  %v1016_v55 = vmul.f32 %v3099_v20, %v444_v41  ;;  %v294_v7 = vsel %vm291_vm8, %v290_v44, %v2311_v21  ;;  %vm3205_vm8 = vmmov %vm3191_vm0 }
 0x2a9   :  { %v524_v47 = vmul.f32 %v3096_v13, %v494_v15  ;;  %v984_v63 = vmul.f32 %v3097_v62, %v494_v15  ;;  %v627_v48 = vadd.f32 %v623_v28, %v595_v4  ;;  %v924_v11 = vadd.f32 %v920_v53, %v892_v43 }
 0x2aa   :  { %v1116_v2 = vadd.f32 %v1112_v18, %v1084_v34  ;;  %v391_v13 = vsel %vm390_vm12, %v2489_v27, %v385_v17  ;;  %v426_v15 = vadd.f32 %v422_v40, %v376_v60  ;;  %v323_v62 = vmul.f32 %v3100_v45, %v293_v39 }
 0x2ab   :  { %v2519_v57 = vpop.permute.xlu1 %670  ;;  %v2521_v42 = vpop.permute.xlu0 %484  ;;  %v528_v19 = vadd.f32 %v524_v47, %v474_v46  ;;  %v1020_v41 = vadd.f32 %v1016_v55, %v984_v63  ;;  %v3101_v21 = vrot.slane %v1976_v30, %v2118_v3  ;;  %v3102_v28 = vrot.slane %v1984_v31, %v2116_v1 }
 0x2ac   :  { %v3103_v17 = vrot.slane %v1984_v31, %v2118_v3  ;;  %v3104_v44 = vrot.slane %v1989_v32, %v2116_v1  ;;  %v3106_v34 = vrot.slane %v1989_v32, %v2118_v3  ;;  %v3108_v30 = vrot.slane %v2004_v35, %v2116_v1 }
 0x2ad   :  { %v324_v4 = vmul.f32 %v3101_v21, %v294_v7  ;;  %v560_v53 = vmul.f32 %v3102_v28, %v293_v39  ;;  %v3110_v63 = vrot.slane %v2109_v61, %v1991_v33  ;;  %v677_v60 = vsel %vm676_vm15, %v2519_v57, %v2349_v49 }
 0x2ae   :  { %v561_v18 = vmul.f32 %v3103_v17, %v294_v7  ;;  %v2538_v43 = vmul.f32 %v3104_v44, %v293_v39  ;;  %v2543_v40 = vmul.f32 %v3106_v34, %v294_v7  ;;  %v2548_v47 = vmul.f32 %v3108_v30, %v293_v39 }
 0x2af   :  { %v622_v31 = vmul.f32 %v3110_v63, %v391_v13  ;;  %v3111_v46 = vrot.slane %v2004_v35, %v2118_v3  ;;  %v720_v32 = vpop.permute.xlu1 %719  ;;  %v2561_v55 = vpop.permute.xlu0 %717  ;;  %v2563_v45 = vadd.f32 %v655_v58, %v627_v48  ;;  %v956_v39 = vadd.f32 %v952_v38, %v924_v11 }
 0x2b0   :  { %3105 = vst [vmem:[#allocation24_spill] sm:$0xff] %v2538_v43  ;;  %3107 = vst [vmem:[#allocation25_spill] sm:$0xff] %v2543_v40  ;;  %v2566_v21 = vadd.f32 %v2423_v37, %v1116_v2  ;;  %v1156_v28 = vrot.slane %v528_v19, 4  ;;  %v1192_v17 = vrot.slane %v1020_v41, 4  ;;  %v493_v44 = vsel %vm492_vm14, %v2521_v42, %v487_v6 }
 0x2b1   :  { %3109 = vst [vmem:[#allocation26_spill] sm:$0xff] %v2548_v47  ;;  %v2559_v20 = vmul.f32 %v3111_v46, %v294_v7  ;;  %v727_v34 = vsel %vm725_vm2, %v720_v32, %v2388_v50  ;;  %v3114_v35 = vrot.slane %v2232_v12, %v1932_v22  ;;  %v3115_v58 = vrot.slane %v2245_v23, %v1932_v22 }
 0x2b2   :  { %3113 = vst [vmem:[#allocation28_spill] sm:$0xff] %v2566_v21  ;;  %v3116_v2 = vrot.slane %v2248_v9, %v1932_v22  ;;  %v3117_v37 = vrot.slane %v2257_v29, %v1932_v22  ;;  %v3118_v6 = vrot.slane %v2096_v59, %v1991_v33  ;;  %v626_v41 = vadd.f32 %v622_v31, %v594_v51 }
 0x2b3   :  { %3112 = vst [vmem:[#allocation27_spill] sm:$0xff] %v2559_v20  ;;  %v707_v7 = vmul.f32 %v3114_v35, %v677_v60  ;;  %v821_v48 = vmul.f32 %v3115_v58, %v677_v60  ;;  %v3119_v30 = vrot.slane %v2114_v0, %v1991_v33  ;;  %v3120_v60 = vrot.slane %v2138_v14, %v1991_v33  ;;  %v3154_v20 = vld [vmem:[#allocation12_spill] sm:$0xff] }
 0x2b4   :  { %v757_v11 = vmul.f32 %v3116_v2, %v727_v34  ;;  %v789_v38 = vmul.f32 %v3117_v37, %v727_v34  ;;  %v2587_v19 = vmul.f32 %v3118_v6, %v391_v13  ;;  %v3121_v35 = vrot.slane %v2208_v16, %v1991_v33  ;;  %v240_v2 = vpop.permute.xlu1 %239  ;;  %v389_v37 = vpop.permute.xlu0 %388 }
 0x2b5   :  { %v887_v63 = vmul.f32 %v3119_v30, %v391_v13  ;;  %v2595_v46 = vmul.f32 %v3120_v60, %v391_v13  ;;  %v3122_v31 = vrot.slane %v2224_v10, %v1991_v33  ;;  %v726_v13 = vsel %vm725_vm2, %v2561_v55, %v720_v32 }
 0x2b6   :  { %v2600_v22 = vmul.f32 %v3121_v35, %v493_v44  ;;  %v761_v34 = vadd.f32 %v757_v11, %v707_v7  ;;  %v2602_v58 = vadd.f32 %v821_v48, %v789_v38  ;;  %v2615_v30 = vsel %vm241_vm5, %v2071_v54, %v240_v2 }
 0x2b7   :  { %v2609_v6 = vmul.f32 %v3122_v31, %v493_v44  ;;  %3123 = vst [vmem:[#allocation29_spill] sm:$0xff] %v2615_v30  ;;  %v2619_v7 = vsel %vm241_vm5, %v240_v2, %v2275_v36  ;;  %v3125_v48 = vrot.slane %v1948_v25, %v2116_v1  ;;  %v3126_v44 = vrot.slane %v1948_v25, %v2118_v3  ;;  %v3132_v31 = vld [vmem:[#allocation14_spill] sm:$0xff] }
 0x2b8   :  { %3124 = vst [vmem:[#allocation30_spill] sm:$0xff] %v2619_v7  ;;  %v1200_v32 = vsel %vm3127_vm4, %v426_v15, %v1156_v28  ;;  %v2631_v60 = vsel %vm3128_vm9, %v956_v39, %v1192_v17  ;;  %v3130_v54 = vrot.slane %v1953_v26, %v2116_v1  ;;  %v3131_v35 = vrot.slane %v1953_v26, %v2118_v3  ;;  %v333_v51 = vpop.permute.xlu1 %332  ;;  %v491_v26 = vpop.permute.xlu0 %490  ;;  %vm3225_vm9 = vmmov %vm3191_vm0 }
 0x2b9   :  { %v273_v11 = vmul.f32 %v3125_v48, %v2615_v30  ;;  %v274_v38 = vmul.f32 %v3126_v44, %v2619_v7  ;;  %3129 = vst [vmem:[#allocation31_spill] sm:$0xff] %v2631_v60  ;;  %v393_v48 = vsel %vm390_vm12, %v3132_v31, %v389_v37  ;;  %v399_v25 = vsel %vm390_vm12, %v389_v37, %v2489_v27  ;;  %v3135_v31 = vld [vmem:[#allocation9_spill] sm:$0xff]  ;;  %v3153_v60 = vld [vmem:[#allocation23_spill] sm:$0xff]  ;;  %vm3209_vm12 = vmmov %vm3191_vm0 }
 0x2ba   :  { %v592_v36 = vmul.f32 %v3130_v54, %v2615_v30  ;;  %v593_v2 = vmul.f32 %v3131_v35, %v2619_v7  ;;  %v1168_v15 = vrot.slane %v761_v34, 4  ;;  %v3133_v28 = vrot.slane %v2248_v9, %v1991_v33 }
 0x2bb   :  { %v3134_v44 = vrot.slane %v2257_v29, %v1991_v33  ;;  %v2652_v35 = vadd.f32 %v323_v62, %v273_v11  ;;  %v2654_v43 = vadd.f32 %v324_v4, %v274_v38  ;;  %v3136_v27 = vrot.slane %v3135_v31, %v2116_v1 }
 0x2bc   :  { %v756_v17 = vmul.f32 %v3133_v28, %v726_v13  ;;  %v3137_v37 = vrot.slane %v3135_v31, %v2118_v3  ;;  %v596_v39 = vadd.f32 %v592_v36, %v560_v53  ;;  %v3138_v62 = vrot.slane %v2096_v59, %v2116_v1  ;;  %v3144_v36 = vld [vmem:[#allocation16_spill] sm:$0xff] }
 0x2bd   :  { %v788_v54 = vmul.f32 %v3134_v44, %v726_v13  ;;  %v2660_v34 = vmul.f32 %v3136_v27, %v2615_v30  ;;  %v597_v13 = vadd.f32 %v593_v2, %v561_v18  ;;  %v3139_v4 = vrot.slane %v2096_v59, %v2118_v3  ;;  %v2700_v30 = vpop.permute.xlu1 %434 }
 0x2be   :  { %v2666_v28 = vmul.f32 %v3137_v37, %v2619_v7  ;;  %v2671_v11 = vmul.f32 %v3138_v62, %v393_v48  ;;  %v3141_v44 = vrot.slane %v2109_v61, %v2116_v1  ;;  %v3142_v31 = vrot.slane %v2109_v61, %v2118_v3 }
 0x2bf   :  { %v2676_v38 = vmul.f32 %v3139_v4, %v399_v25  ;;  %v3143_v53 = vrot.slane %v2114_v0, %v2116_v1  ;;  %v341_v2 = vsel %vm340_vm3, %v333_v51, %v3144_v36  ;;  %v3145_v59 = vrot.slane %v2114_v0, %v2118_v3 }
 0x2c0   :  { %v624_v27 = vmul.f32 %v3141_v44, %v393_v48  ;;  %v625_v37 = vmul.f32 %v3142_v31, %v399_v25  ;;  %v3146_v4 = vrot.slane %v2061_v52, %v1991_v33  ;;  %v3147_v44 = vrot.slane %v2078_v56, %v1991_v33 }
 0x2c1   :  { %3140 = vst [vmem:[#allocation14_spill] sm:$0xff] %v2676_v38  ;;  %v889_v18 = vmul.f32 %v3143_v53, %v393_v48  ;;  %v890_v62 = vmul.f32 %v3145_v59, %v399_v25  ;;  %v495_v31 = vsel %vm492_vm14, %v2313_v24, %v491_v26  ;;  %v3148_v53 = vrot.slane %v2138_v14, %v2116_v1  ;;  %v724_v24 = vpop.permute.xlu0 %723 }
 0x2c2   :  { %v371_v47 = vmul.f32 %v3146_v4, %v341_v2  ;;  %v654_v61 = vmul.f32 %v3147_v44, %v341_v2  ;;  %v3150_v0 = vrot.slane %v2138_v14, %v2118_v3  ;;  %v3151_v4 = vld [vmem:[#allocation11_spill] sm:$0xff]  ;;  %v501_v44 = vsel %vm492_vm14, %v491_v26, %v2521_v42  ;;  %vm3214_vm14 = vmmov %vm3191_vm0 }
 0x2c3   :  { %v2705_v36 = vmul.f32 %v3148_v53, %v393_v48  ;;  %v3152_v7 = vrot.slane %v3151_v4, %v1991_v33  ;;  %v628_v21 = vadd.f32 %v624_v27, %v596_v39  ;;  %v629_v38 = vadd.f32 %v625_v37, %v597_v13 }
 0x2c4   :  { %v2710_v59 = vmul.f32 %v3150_v0, %v399_v25  ;;  %v375_v49 = vadd.f32 %v371_v47, %v3153_v60  ;;  %v3155_v48 = vrot.slane %v3154_v20, %v1991_v33  ;;  %v3156_v25 = vrot.slane %v2208_v16, %v2116_v1  ;;  %v3159_v47 = vld [vmem:[#allocation18_spill] sm:$0xff] }
 0x2c5   :  { %3149 = vst [vmem:[#allocation9_spill] sm:$0xff] %v2705_v36  ;;  %v855_v40 = vmul.f32 %v3152_v7, %v341_v2  ;;  %v2721_v36 = vadd.f32 %v654_v61, %v626_v41  ;;  %v1204_v7 = vsel %vm3157_vm7, %v2563_v45, %v1168_v15  ;;  %v3158_v42 = vrot.slane %v2208_v16, %v2118_v3  ;;  %vm3226_vm7 = vmmov %vm3191_vm0 }
 0x2c6   :  { %v1079_v53 = vmul.f32 %v3155_v48, %v341_v2  ;;  %v525_v0 = vmul.f32 %v3156_v25, %v495_v31  ;;  %v1217_v26 = vpack.c.bf16 %v1204_v7, %v1200_v32  ;;  %v451_v60 = vsel %vm443_vm10, %v2700_v30, %v3159_v47 }
 0x2c7   :  { %v891_v14 = vadd.f32 %v887_v63, %v855_v40  ;;  %v526_v39 = vmul.f32 %v3158_v42, %v501_v44  ;;  %v728_v41 = vsel %vm725_vm2, %v2388_v50, %v724_v24  ;;  %v2736_v40 = vpop.permute.xlu1 %667  ;;  %v3160_v63 = vld [vmem:[#allocation19_spill] sm:$0xff]  ;;  %v3161_v27 = vrot.slane %v2146_v5, %v1991_v33 }
 0x2c8   :  { %v3162_v16 = vrot.slane %v2161_v8, %v1991_v33  ;;  %v734_v32 = vsel %vm725_vm2, %v724_v24, %v2561_v55  ;;  %v425_v37 = vadd.f32 %v2587_v19, %v375_v49  ;;  %v1083_v2 = vadd.f32 %v1079_v53, %v2595_v46  ;;  %1244 = vmatprep.subr.bf16.mxu0 %v1217_v26  ;;  %vm3221_vm2 = vmmov %vm3191_vm0 }
 0x2c9   :  { %v923_v13 = vadd.f32 %v3160_v63, %v891_v14  ;;  %v473_v45 = vmul.f32 %v3161_v27, %v451_v60  ;;  %v3163_v50 = vrot.slane %v2224_v10, %v2116_v1  ;;  %v3164_v48 = vrot.slane %v2224_v10, %v2118_v3  ;;  %v3172_v63 = vld [vmem:[#allocation13_spill] sm:$0xff] }
 0x2ca   :  { %v1015_v15 = vmul.f32 %v3162_v16, %v451_v60  ;;  %v3165_v25 = vrot.slane %v2248_v9, %v2116_v1  ;;  %v3166_v49 = vrot.slane %v2248_v9, %v2118_v3  ;;  %v3167_v19 = vrot.slane %v2257_v29, %v2116_v1  ;;  %v3171_v60 = vld [vmem:[#allocation21_spill] sm:$0xff] }
 0x2cb   :  { %v2752_v61 = vmul.f32 %v3163_v50, %v495_v31  ;;  %v986_v14 = vmul.f32 %v3164_v48, %v501_v44  ;;  %v684_v10 = vsel %vm676_vm15, %v2736_v40, %v2519_v57  ;;  %v527_v31 = vadd.f32 %v2600_v22, %v473_v45  ;;  %v339_v47 = vpop.permute.xlu1 %338 }
 0x2cc   :  { %v2760_v7 = vmul.f32 %v3165_v25, %v728_v41  ;;  %v2765_v55 = vmul.f32 %v3166_v49, %v734_v32  ;;  %v2770_v46 = vmul.f32 %v3167_v19, %v728_v41  ;;  %v3168_v44 = vrot.slane %v2257_v29, %v2118_v3 }
 0x2cd   :  { %v3169_v9 = vrot.slane %v2232_v12, %v1991_v33  ;;  %v3170_v42 = vrot.slane %v2245_v23, %v1991_v33  ;;  %v955_v41 = vadd.f32 %v3171_v60, %v923_v13  ;;  %v1019_v57 = vadd.f32 %v1015_v15, %v2609_v6  ;;  %v3175_v33 = vld [vmem:[#allocation6_spill] sm:$0xff] }
 0x2ce   :  { %v2779_v24 = vmul.f32 %v3168_v44, %v734_v32  ;;  %v343_v22 = vsel %vm340_vm3, %v3172_v63, %v339_v47  ;;  %v349_v29 = vsel %vm340_vm3, %v339_v47, %v333_v51  ;;  %v3173_v16 = vrot.slane %v2061_v52, %v2116_v1  ;;  %vm3211_vm3 = vmmov %vm3191_vm0 }
 0x2cf   :  { %v706_v53 = vmul.f32 %v3169_v9, %v684_v10  ;;  %v820_v26 = vmul.f32 %v3170_v42, %v684_v10  ;;  %v3174_v50 = vrot.slane %v2602_v58, 4  ;;  %v3177_v13 = vrot.slane %v2061_v52, %v2118_v3  ;;  %v442_v44 = vpop.permute.xlu1 %441  ;;  %v3182_v9 = vld [vmem:[#allocation22_spill] sm:$0xff] }
 0x2d0   :  { %v373_v32 = vmul.f32 %v3173_v16, %v343_v22  ;;  %v3178_v15 = vrot.slane %v2078_v56, %v2116_v1  ;;  %v3179_v51 = vrot.slane %v3151_v4, %v2116_v1  ;;  %v1155_v58 = vrot.slane %v527_v31, 4 }
 0x2d1   :  { %v760_v27 = vadd.f32 %v756_v17, %v706_v53  ;;  %v824_v45 = vadd.f32 %v820_v26, %v788_v54  ;;  %v1208_v48 = vsel %vm3176_vm6, %v3175_v33, %v3174_v50  ;;  %v374_v6 = vmul.f32 %v3177_v13, %v349_v29 }
 0x2d2   :  { %v656_v25 = vmul.f32 %v3178_v15, %v343_v22  ;;  %v857_v17 = vmul.f32 %v3179_v51, %v343_v22  ;;  %v3180_v54 = vrot.slane %v3151_v4, %v2118_v3  ;;  %v377_v19 = vadd.f32 %v373_v32, %v2652_v35  ;;  %v3185_v32 = vld [vmem:[#allocation15_spill] sm:$0xff]  ;;  %v3189_v15 = vld [vmem:[#allocation9_spill] sm:$0xff] }
 0x2d3   :  { %v3181_v10 = vrot.slane %v2078_v56, %v2118_v3  ;;  %v1115_v53 = vadd.f32 %v3182_v9, %v1083_v2  ;;  %v1191_v42 = vrot.slane %v1019_v57, 4  ;;  %v1167_v26 = vrot.slane %v760_v27, 4 }
 0x2d4   :  { %v858_v49 = vmul.f32 %v3180_v54, %v349_v29  ;;  %v893_v47 = vadd.f32 %v889_v18, %v857_v17  ;;  %v1179_v63 = vrot.slane %v824_v45, 4  ;;  %v3183_v16 = vrot.slane %v3154_v20, %v2116_v1  ;;  %v675_v45 = vpop.permute.xlu1 %674 }
 0x2d5   :  { %v657_v52 = vmul.f32 %v3181_v10, %v349_v29  ;;  %v3184_v31 = vrot.slane %v3154_v20, %v2118_v3  ;;  %v445_v56 = vsel %vm443_vm10, %v3185_v32, %v442_v44  ;;  %v378_v50 = vadd.f32 %v374_v6, %v2654_v43 }
 0x2d6   :  { %v894_v60 = vadd.f32 %v890_v62, %v858_v49  ;;  %v1081_v4 = vmul.f32 %v3183_v16, %v343_v22  ;;  %v660_v33 = vadd.f32 %v656_v25, %v628_v21  ;;  %v446_v2 = vsel %vm443_vm10, %v442_v44, %v2700_v30  ;;  %vm3212_vm10 = vmmov %vm3191_vm0 }
 0x2d7   :  { %v1082_v35 = vmul.f32 %v3184_v31, %v349_v29  ;;  %v3186_v18 = vrot.slane %v2146_v5, %v2116_v1  ;;  %v427_v57 = vadd.f32 %v2671_v11, %v377_v19  ;;  %v661_v22 = vadd.f32 %v657_v52, %v629_v38 }
 0x2d8   :  { %v3187_v20 = vrot.slane %v2146_v5, %v2118_v3  ;;  %v925_v43 = vadd.f32 %v2660_v34, %v893_v47  ;;  %v926_v21 = vadd.f32 %v2666_v28, %v894_v60  ;;  %v3188_v30 = vrot.slane %v2161_v8, %v2118_v3  ;;  %v3192_v5 = vld [vmem:[#allocation27_spill] sm:$0xff]  ;;  %v3200_v60 = vld [vmem:[#allocation5_spill] sm:$0xff] }
 0x2d9   :  { %v475_v62 = vmul.f32 %v3186_v18, %v445_v56  ;;  %v1086_v27 = vadd.f32 %v1082_v35, %v2710_v59  ;;  %v1085_v25 = vadd.f32 %v1081_v4, %v3189_v15  ;;  %v1199_v38 = vsel %vm3190_vm1, %v425_v37, %v1155_v58 }
 0x2da   :  { %v476_v29 = vmul.f32 %v3187_v20, %v446_v2  ;;  %v1018_v6 = vmul.f32 %v3188_v30, %v446_v2  ;;  %v1203_v59 = vsel %vm3191_vm0, %v2721_v36, %v1167_v26  ;;  %v3193_v34 = vrot.slane %v2161_v8, %v2116_v1  ;;  %v3199_v26 = vld [vmem:[#allocation31_spill] sm:$0xff]  ;;  %v3210_v20 = vld [vmem:[#allocation25_spill] sm:$0xff]  ;;  %v3213_v30 = vld [vmem:[#allocation8_spill] sm:$0xff] }
 0x2db   :  { %v529_v13 = vadd.f32 %v525_v0, %v475_v62  ;;  %v1118_v51 = vadd.f32 %v3192_v5, %v1086_v27  ;;  %v1216_v28 = vpack.c.bf16 %v1203_v59, %v1199_v38  ;;  %v3194_v0 = vld [vmem:[#allocation17_spill] sm:$0xff]  ;;  %v3195_v37 = vrot.slane %v2232_v12, %v2116_v1 }
 0x2dc   :  { %v530_v11 = vadd.f32 %v526_v39, %v476_v29  ;;  %v1017_v17 = vmul.f32 %v3193_v34, %v445_v56  ;;  %v678_v54 = vsel %vm676_vm15, %v3194_v0, %v675_v45  ;;  %v1022_v49 = vadd.f32 %v1018_v6, %v986_v14  ;;  %v3216_v6 = vld [vmem:[#allocation10_spill] sm:$0xff]  ;;  %v3223_v0 = vld [vmem:[#allocation24_spill] sm:$0xff] }
 0x2dd   :  { %v1157_v19 = vrot.slane %v529_v13, 4  ;;  %v679_v39 = vsel %vm676_vm15, %v675_v45, %v2736_v40  ;;  %v708_v58 = vmul.f32 %v3195_v37, %v678_v54  ;;  %1245 = vmatpush1.bf16.msra.mxu0 %v1216_v28  ;;  %v3196_v10 = vrot.slane %v2232_v12, %v2118_v3  ;;  %v3222_v28 = vld [vmem:[#allocation26_spill] sm:$0xff] }
 0x2de   :  { %v1158_v36 = vrot.slane %v530_v11, 4  ;;  %v3197_v52 = vrot.slane %v2245_v23, %v2116_v1  ;;  %v3198_v14 = vrot.slane %v2245_v23, %v2118_v3  ;;  %v1221_v47 = vpack.c.bf16 %v3199_v26, %v1208_v48 }
 0x2df   :  { %v709_v8 = vmul.f32 %v3196_v10, %v679_v39  ;;  %v762_v40 = vadd.f32 %v2760_v7, %v708_v58  ;;  %v1207_v16 = vsel %vm3201_vm11, %v3200_v60, %v1179_v63  ;;  %v1211_v4 = vsel %vm3202_vm13, %v955_v41, %v1191_v42  ;;  %v3203_v7 = vld [vmem:[#allocation20_spill] sm:$0xff]  ;;  %v3204_v63 = vld [vmem:[#allocation14_spill] sm:$0xff]  ;;  %vm3230_vm11 = vmmov %vm3191_vm0 }
 0x2e0   :  { %v822_v44 = vmul.f32 %v3197_v52, %v678_v54  ;;  %v823_v9 = vmul.f32 %v3198_v14, %v679_v39  ;;  %v1220_v32 = vpack.c.bf16 %v1211_v4, %v1207_v16  ;;  %v1021_v56 = vadd.f32 %v1017_v17, %v2752_v61  ;;  %1246 = vmatprep.subr.bf16.mxu0 %v1221_v47  ;;  %v3206_v42 = vld [vmem:[#allocation28_spill] sm:$0xff]  ;;  %v1215_v17 = vld [vmem:[%s2963_s6] sm:$0x3]  ;;  %vm3231_vm13 = vmmov %vm3191_vm0 }
 0x2e1   :  { %v763_v12 = vadd.f32 %v2765_v55, %v709_v8  ;;  %v1194_v23 = vrot.slane %v1022_v49, 4  ;;  %v1169_v2 = vrot.slane %v762_v40, 4  ;;  %v1147_v18 = vadd.f32 %v3203_v7, %v1115_v53 }
 0x2e2   :  { %v826_v31 = vadd.f32 %v822_v44, %v2770_v46  ;;  %v827_v35 = vadd.f32 %v823_v9, %v2779_v24  ;;  %1247 = vmatpush1.bf16.msra.mxu0 %v1220_v32  ;;  %v428_v27 = vadd.f32 %v3204_v63, %v378_v50  ;;  %v1201_v41 = vsel %vm3205_vm8, %v427_v57, %v1157_v19  ;;  %v3215_v57 = vld [vmem:[#allocation30_spill] sm:$0xff]  ;;  %v3224_v19 = vld [vmem:[#allocation7_spill] sm:$0xff]  ;;  %vm3232_vm8 = vmmov %vm3191_vm0 }
 0x2e3   :  { %v1170_v48 = vrot.slane %v763_v12, 4  ;;  %v3207_v46 = vpack.c.bf16 %v3206_v42, %v3206_v42  ;;  %vm3208_vm5 = vcmask 1041408   ;;  %v1224_v24 = vpack.c.bf16 %v1147_v18, %v1147_v18 }
 0x2e4   :  { %v1182_v62 = vrot.slane %v827_v35, 4  ;;  %v1181_v55 = vrot.slane %v826_v31, 4  ;;  %v1205_v61 = vsel %vm3209_vm12, %v660_v33, %v1169_v2  ;;  %v958_v29 = vadd.f32 %v3210_v20, %v926_v21  ;;  %vm3218_vm15 = vmmov %vm3208_vm5  ;;  %v3219_v33 = vld [vmem:[#allocation29_spill] sm:$0xff] }
 0x2e5   :  { %1596 = vmatprep.subr.msk.bf16.mxu0 %vm3208_vm5, %v3207_v46  ;;  %v1202_v53 = vsel %vm3211_vm3, %v428_v27, %v1158_v36  ;;  %v1206_v45 = vsel %vm3212_vm10, %v661_v22, %v1170_v48  ;;  %v1218_v13 = vpack.c.bf16 %v1205_v61, %v1201_v41  ;;  %v3217_v15 = vrot.slane %v3216_v6, %v2118_v3  ;;  %vm3228_vm6 = vmmov %vm3208_vm5 }
 0x2e6   :  { %v1210_v50 = vsel %vm3214_vm14, %v3213_v30, %v1182_v62  ;;  %v1193_v38 = vrot.slane %v1021_v56, 4  ;;  %v1233_v59 = vsel %vm3218_vm15, %v1224_v24, 0  ;;  %v1219_v5 = vpack.c.bf16 %v1206_v45, %v1202_v53  ;;  %vm3229_vm1 = vmmov %vm3208_vm5  ;;  %v1352_v45 = vld [vmem:[%s2964_s7] sm:$0xf] }
 0x2e7   :  { %v1146_v11 = vmul.f32 %v3217_v15, %v3215_v57  ;;  %v3220_v21 = vrot.slane %v3216_v6, %v2116_v1  ;;  %1249 = vmatpush1.bf16.msra.mxu0 %v1233_v59  ;;  %v1214_v22 = vsel %vm3221_vm2, %v958_v29, %v1194_v23  ;;  %vm1228_vm4 = vcmask 293888   ;;  %vm3233_vm5 = vmmov %vm3191_vm0 }
 0x2e8   :  { %v1117_v3 = vadd.f32 %v3222_v28, %v1085_v25  ;;  %v957_v54 = vadd.f32 %v3223_v0, %v925_v43  ;;  %1285 = vmatprep.subr.bf16.mxu1 %v1219_v5  ;;  %v1223_v49 = vpack.c.bf16 %v1214_v22, %v1210_v50  ;;  %v1209_v39 = vsel %vm3225_vm9, %v3224_v19, %v1181_v55  ;;  %vm3234_vm12 = vmmov %vm3191_vm0  ;;  %v1365_v50 = vld [vmem:[%s2965_s8] sm:$0xf] }
 0x2e9   :  { %v1145_v34 = vmul.f32 %v3220_v21, %v3219_v33  ;;  %v1150_v37 = vadd.f32 %v1146_v11, %v1118_v51  ;;  %1286 = vmatpush1.bf16.msra.mxu1 %v1218_v13  ;;  %v3227_v10 = vmov 0   ;;  %vm3235_vm3 = vmmov %vm3191_vm0  ;;  %v1625_v0 = vld [vmem:[%s2957_s0] sm:$0xff]  ;;  %vm3241_vm9 = vcmask 31744  }
 0x2ea   :  { %1287 = vmatprep.subr.bf16.mxu1 %v1223_v49  ;;  %v1213_v58 = vsel %vm3226_vm7, %v957_v54, %v1193_v38  ;;  %1597 = vmatmul.mubr.msk.bf16.vlgmr.msra.gmra.mrb[4].mxu0 %vm1228_vm4, %v1215_v17  ;;  %vm3236_vm10 = vmmov %vm3191_vm0  ;;  %v1626_v49 = vld [vmem:[%s2957_s0 + $0x8] sm:$0xff] }
 0x2eb   :  { %v1149_v1 = vadd.f32 %v1145_v34, %v1117_v3  ;;  %v1222_v36 = vpack.c.bf16 %v1213_v58, %v1209_v39  ;;  %1449 = vmatprep.mubr.bf16.mxu0 %v3227_v10  ;;  %v1227_v8 = vpack.c.bf16 %v1150_v37, %v1150_v37  ;;  %vm3237_vm14 = vmmov %vm3229_vm1 }
 0x2ec   :  { %vm3238_vm15 = vmmov %vm3229_vm1 }
 0x2ed   :  { %v1226_v25 = vpack.c.bf16 %v1149_v1, %v1149_v1  ;;  %1288 = vmatpush1.bf16.msra.mxu1 %v1222_v36  ;;  %vm3239_vm2 = vmmov %vm3229_vm1 }
 0x2ee   :  { %1598 = vmatprep.subr.msk.bf16.mxu1 %vm3228_vm6, %v1227_v8  ;;  %vm3242_vm7 = vmmov %vm3241_vm9 }
 0x2ef   :  { %v1239_v43 = vsel %vm3229_vm1, %v1226_v25, 0 }
 0x2f1   :  { %1290 = vmatpush1.bf16.msra.mxu1 %v1239_v43 }
 0x2f4   :  { %1599 = vmatmul.mubr.msk.bf16.vlgmr.msra.gmra.mrb[4].mxu1 %vm1228_vm4, %v1215_v17  ;;  %vm3240_vm4 = vmmov %vm3229_vm1 }
 0x2f5   :  { %1490 = vmatprep.mubr.bf16.mxu1 %v3227_v10 }
 0x3bd   :  { %v1278_v51 = vpop.f32.mrb[4].mxu0 }
 0x3be   :  { %v1326_v52 = vsel %vm3191_vm0, %v1278_v51, 0.0  ;;  %v1335_v44 = vmul.f32 %v1278_v51, %v1278_v51  ;;  %v1280_v14 = vpop.f32.mrb[5].mxu0 }
 0x3bf   :  { %v1327_v9 = vsel %vm3230_vm11, %v1280_v14, 0.0  ;;  %v1336_v40 = vmul.f32 %v1280_v14, %v1280_v14  ;;  %v1282_v26 = vpop.f32.mrb[6].mxu0 }
 0x3c0   :  { %v1339_v47 = vsel %vm3231_vm13, %v1335_v44, 0.0  ;;  %v1328_v60 = vadd.f32 %v1327_v9, %v1326_v52  ;;  %v1283_v16 = vpop.f32.mrb[7].mxu0 }
 0x3c1   :  { %v1340_v4 = vsel %vm3232_vm8, %v1336_v40, 0.0 }
 0x3c2   :  { %v1341_v12 = vadd.f32 %v1340_v4, %v1339_v47 }
 0x3c7   :  { %v1319_v31 = vpop.f32.mrb[4].mxu1 }
 0x3c8   :  { %v1329_v35 = vsel %vm3233_vm5, %v1319_v31, 0.0  ;;  %v1337_v32 = vmul.f32 %v1319_v31, %v1319_v31  ;;  %v1321_v56 = vpop.f32.mrb[5].mxu1 }
 0x3c9   :  { %v1338_v23 = vmul.f32 %v1321_v56, %v1321_v56  ;;  %v1323_v2 = vpop.f32.mrb[6].mxu1  ;;  %v1330_v7 = vadd.f32 %v1329_v35, %v1328_v60  ;;  %v1331_v18 = vsel %vm3234_vm12, %v1321_v56, 0.0 }
 0x3ca   :  { %v1324_v48 = vpop.f32.mrb[7].mxu1  ;;  %v1342_v62 = vsel %vm3235_vm3, %v1337_v32, 0.0 }
 0x3cb   :  { %v1332_v63 = vadd.f32 %v1331_v18, %v1330_v7  ;;  %v1343_v27 = vadd.f32 %v1342_v62, %v1341_v12  ;;  %v1344_v41 = vsel %vm3236_vm10, %v1338_v23, 0.0 }
 0x3cd   :  { %1333 = vadd.xlane.f32.xlu1 %v1332_v63  ;;  %v1345_v55 = vadd.f32 %v1344_v41, %v1343_v27 }
 0x3cf   :  { %1346 = vadd.xlane.f32.xlu0 %v1345_v55 }
 0x45a   :  { %v1334_v42 = vpop.xlane.xlu1 %1333 }
 0x45b   :  { %v1348_v46 = vmul.f32 0.001953125, %v1334_v42 }
 0x45c   :  { %v1347_v24 = vpop.xlane.xlu0 %1346 }
 0x45d   :  { %v1350_v61 = vmul.f32 %v1348_v46, %v1348_v46  ;;  %v1349_v20 = vmul.f32 0.001953125, %v1347_v24 }
 0x45f   :  { %v1351_v29 = vsub.f32 %v1349_v20, %v1350_v61  ;;  %v1517_v61 = vld [vmem:[%s2967_s10] sm:$0xff]  ;;  %s1661_s10 = smov [#allocation2]  }
 0x460   :  { %s1560_s4 = sshll.u32 %s1661_s10, 4  ;;  %s1561_s4 = int_to_ptr.vmem [resolvable:$true] %s1560_s4 }
 0x461   :  { %v1353_v53 = vadd.f32 1e-05, %v1351_v29  ;;  %p1632_p1 = scmp.lt.s32.totalorder %s1561_s4, %s1561_s4 }
 0x463   :  { %1621 = vrsqrt.f32 %v1353_v53  ;;  %v1530_v53 = vld [vmem:[%s2968_s11] sm:$0xff]  ;;  %s1627_s11 = scalar_lea.vmem %s1561_s4, 512 }
 0x464   :  { %p1628_p0 = scmp.ne.s32.totalorder %s1561_s4, %s1627_s11  ;;  %p1633_p2 = scmp.lt.s32.totalorder %s1627_s11, %s1627_s11 }
 0x466   :  { %p1634_p3 = por %p1633_p2, %p1632_p1 }
 0x468   :  { %p1635_p4 = pnand %p1634_p3, %p1628_p0 }
 0x46d   :  { %v1622_v13 = vpop.eup %1621 }
 0x46e   :  { %v1355_v30 = vmul.f32 %v1622_v13, %v1352_v45 }
 0x470   :  { %1358 = vperm.xlu0 %1616, %v1355_v30   ;;  %v1366_v57 = vmul.f32 %v1355_v30, %v1348_v46 }
 0x472   :  { %v1367_v6 = vsub.f32 %v1365_v50, %v1366_v57 }
 0x474   :  { %1370 = vperm.xlu1 %1615, %v1367_v6  }
 0x4ef   :  { %v1359_v15 = vpop.permute.xlu0 %1358 }
 0x4f0   :  { %v1361_v11 = vmul.f32 %v1359_v15, %v1278_v51  ;;  %v1362_v38 = vmul.f32 %v1359_v15, %v1280_v14  ;;  %v1363_v59 = vmul.f32 %v1359_v15, %v1319_v31  ;;  %v1364_v5 = vmul.f32 %v1359_v15, %v1321_v56  ;;  %v1391_v14 = vld [vmem:[%s2966_s9] sm:$0xf] }
 0x4f3   :  { %v1371_v33 = vpop.permute.xlu1 %1370 }
 0x4f4   :  { %v1373_v21 = vadd.f32 %v1371_v33, %v1361_v11  ;;  %v1374_v34 = vadd.f32 %v1371_v33, %v1362_v38  ;;  %v1375_v22 = vadd.f32 %v1371_v33, %v1363_v59  ;;  %v1376_v17 = vadd.f32 %v1371_v33, %v1364_v5 }
 0x4f6   :  { %v1381_v28 = vcombine.low %v1373_v21, %v1374_v34  ;;  %v1382_v3 = vcombine.low %v1375_v22, %v1376_v17 }
 0x4f8   :  { %v1385_v54 = vadd.f32 %v1625_v0, %v1381_v28  ;;  %v1386_v19 = vadd.f32 %v1626_v49, %v1382_v3 }
 0x4fa   :  { %v1387_v39 = vmul.f32 0.2, %v1385_v54  ;;  %v1388_v37 = vmul.f32 0.2, %v1386_v19 }
 0x4fc   :  { %v1389_v1 = vmax.f32 %v1385_v54, %v1387_v39  ;;  %v1390_v58 = vmax.f32 %v1386_v19, %v1388_v37 }
 0x4fe   :  { %v1394_v36 = vcombine.high %v1389_v1, %v1389_v1  ;;  %v1395_v10 = vcombine.high %v1390_v58, %v1390_v58  ;;  %v1398_v8 = vpack.c.bf16 %v1389_v1, %v1389_v1  ;;  %v1400_v25 = vpack.c.bf16 %v1390_v58, %v1390_v58 }
 0x500   :  { %v1399_v43 = vpack.c.bf16 %v1394_v36, %v1394_v36  ;;  %v1401_v51 = vpack.c.bf16 %v1395_v10, %v1395_v10  ;;  %v1406_v52 = vsel %vm3239_vm2, %v1398_v8, 0  ;;  %v1412_v44 = vsel %vm3240_vm4, %v1400_v25, 0 }
 0x502   :  { %1600 = vmatprep.subr.msk.bf16.mxu0 %vm3237_vm14, %v1399_v43  ;;  %1602 = vmatprep.subr.msk.bf16.mxu1 %vm3238_vm15, %v1401_v51 }
 0x503   :  { %1418 = vmatpush1.bf16.msra.mxu0 %v1406_v52  ;;  %1459 = vmatpush1.bf16.msra.mxu1 %v1412_v44 }
 0x506   :  { %1601 = vmatmul.mubr.msk.bf16.vlgmr.msra.gmra.mrb[8].mxu0 %vm3241_vm9, %v1391_v14  ;;  %1603 = vmatmul.mubr.msk.bf16.vlgmr.msra.gmra.mrb[8].mxu1 %vm3242_vm7, %v1391_v14 }
 0x5d9   :  { %v1451_v9 = vpop.f32.mrb[8].mxu0  ;;  %v1492_v40 = vpop.f32.mrb[8].mxu1 }
 0x5da   :  { %v1504_v26 = vmul.f32 %v1451_v9, %v1451_v9  ;;  %v1453_v47 = vpop.f32.mrb[9].mxu0  ;;  %v1494_v60 = vpop.f32.mrb[9].mxu1  ;;  %v1506_v12 = vmul.f32 %v1492_v40, %v1492_v40 }
 0x5db   :  { %v1499_v16 = vadd.f32 %v1453_v47, %v1451_v9  ;;  %v1505_v4 = vmul.f32 %v1453_v47, %v1453_v47  ;;  %v1455_v31 = vpop.f32.mrb[10].mxu0  ;;  %v1496_v35 = vpop.f32.mrb[10].mxu1  ;;  %v1507_v18 = vmul.f32 %v1494_v60, %v1494_v60 }
 0x5dc   :  { %v1456_v32 = vpop.f32.mrb[11].mxu0  ;;  %v1497_v56 = vpop.f32.mrb[11].mxu1 }
 0x5dd   :  { %v1500_v23 = vadd.f32 %v1499_v16, %v1492_v40  ;;  %v1508_v2 = vadd.f32 %v1505_v4, %v1504_v26 }
 0x5df   :  { %v1501_v7 = vadd.f32 %v1500_v23, %v1494_v60  ;;  %v1509_v48 = vadd.f32 %v1508_v2, %v1506_v12 }
 0x5e1   :  { %1502 = vadd.xlane.f32.xlu1 %v1501_v7  ;;  %v1510_v62 = vadd.f32 %v1509_v48, %v1507_v18 }
 0x5e3   :  { %1511 = vadd.xlane.f32.xlu0 %v1510_v62 }
 0x66e   :  { %v1503_v63 = vpop.xlane.xlu1 %1502 }
 0x66f   :  { %v1513_v27 = vmul.f32 0.001953125, %v1503_v63 }
 0x670   :  { %v1512_v41 = vpop.xlane.xlu0 %1511 }
 0x671   :  { %v1515_v55 = vmul.f32 %v1513_v27, %v1513_v27  ;;  %v1514_v42 = vmul.f32 0.001953125, %v1512_v41 }
 0x673   :  { %v1516_v46 = vsub.f32 %v1514_v42, %v1515_v55 }
 0x675   :  { %v1518_v24 = vadd.f32 1e-05, %v1516_v46 }
 0x677   :  { %1623 = vrsqrt.f32 %v1518_v24 }
 0x681   :  { %v1624_v20 = vpop.eup %1623 }
 0x682   :  { %v1520_v29 = vmul.f32 %v1624_v20, %v1517_v61 }
 0x684   :  { %1523 = vperm.xlu1 %1615, %v1520_v29   ;;  %v1531_v45 = vmul.f32 %v1520_v29, %v1513_v27 }
 0x686   :  { %v1532_v13 = vsub.f32 %v1530_v53, %v1531_v45 }
 0x688   :  { %1535 = vperm.xlu1 %1615, %v1532_v13  }
 0x703   :  { %v1524_v30 = vpop.permute.xlu1 %1523 }
 0x704   :  { %v1526_v50 = vmul.f32 %v1524_v30, %v1451_v9  ;;  %v1527_v57 = vmul.f32 %v1524_v30, %v1453_v47  ;;  %v1528_v6 = vmul.f32 %v1524_v30, %v1492_v40  ;;  %v1529_v15 = vmul.f32 %v1524_v30, %v1494_v60 }
 0x707   :  { %v1536_v11 = vpop.permute.xlu1 %1535 }
 0x708   :  { %v1538_v38 = vadd.f32 %v1536_v11, %v1526_v50  ;;  %v1539_v59 = vadd.f32 %v1536_v11, %v1527_v57  ;;  %v1540_v5 = vadd.f32 %v1536_v11, %v1528_v6  ;;  %v1541_v33 = vadd.f32 %v1536_v11, %v1529_v15 }
 0x70a   :  { %v1542_v21 = vmul.f32 0.2, %v1538_v38  ;;  %v1543_v34 = vmul.f32 0.2, %v1539_v59  ;;  %v1544_v22 = vmul.f32 0.2, %v1540_v5 }
 0x70b   :  { %v1545_v17 = vmul.f32 0.2, %v1541_v33 }
 0x70c   :  { %v1546_v28 = vmax.f32 %v1538_v38, %v1542_v21  ;;  %v1547_v3 = vmax.f32 %v1539_v59, %v1543_v34  ;;  %v1548_v0 = vmax.f32 %v1540_v5, %v1544_v22 }
 0x70d   :  { %v1549_v54 = vmax.f32 %v1541_v33, %v1545_v17 }
 0x70e   :  { %1550 = vst [vmem:[#allocation2] sm:$0xff] %v1546_v28  ;;  %1551 = vst [vmem:[#allocation2 + $0x8] sm:$0xff] %v1547_v3 }
 0x70f   :  { %1552 = vst [vmem:[#allocation2 + $0x10] sm:$0xff] %v1548_v0  ;;  %1553 = vst [vmem:[#allocation2 + $0x18] sm:$0xff] %v1549_v54 }
 0x710   :  { %1638 = shalt.err (!%p1635_p4)
}
 0x711   :  { %s1639_s13 = scalar_lea.hbm %s2969_s12, 512 }
 0x712   :  { %p1640_p5 = scmp.ne.s32.totalorder %s2969_s12, %s1639_s13  ;;  %p1643_p6 = scmp.lt.u32.totalorder %s1639_s13, %s2969_s12 }
 0x714   :  { %p1645_p7 = pnand %p1643_p6, %p1640_p5 }
 0x716   :  { %1648 = shalt.err (!%p1645_p7)
}
 0x717   :  { %1563 = dma.vmem_to_hbm [thread:$0]  %s1561_s4, 512, %s2969_s12, [#allocation3]  }
 0x718   :  { %1649 = dma.done.wait [#allocation3], 512  }
 0x719   :  { %1650 = vsyncadd [#allocation3], 4294966784 }
 0x71a   :  { %1567 = vsyncpa [#allocation3], 1 }

</bundles_post_ra>
